<compile_context>
chip_gen: v7x
topology: tpu7x:2x2x1
jax: 0.10.0
libtpu: 0.0.40
codegen_flags: <defaults>
</compile_context>

<pallas_src>
import math
from functools import partial

import jax
import jax.numpy as jnp
from jax.experimental import pallas as pl
from jax.experimental.pallas import tpu as pltpu


def _round_up(a, m):
    return ((a + m - 1) // m) * m


def news_encoder_kernel(x_ref, wqkv_ref, wa_ref, ba_ref, qv_ref, out_ref, *,
                        num_heads):
    TB, T, D = x_ref.shape
    H = num_heads
    dk = D // H
    scale = 1.0 / math.sqrt(dk)

    x = x_ref[...]                                   # (TB, T, D) f32
    xf = x.reshape(TB * T, D)                        # T is sublane-aligned (8)

    # ---- fused Q/K/V projection: one lane-dense MXU matmul ----
    qkv = jnp.dot(xf, wqkv_ref[...],
                  preferred_element_type=jnp.float32)          # (TB*T, 128)
    qkv = qkv.reshape(TB, T, wqkv_ref.shape[1])

    # ---- per-head scaled-dot-product attention ----
    # TODO(synk): for large head counts, batch heads into a single dot_general
    # over (B*H); at H=4 / dk=8 the per-head matmuls are tiny either way and the
    # fused projection above removes the dominant per-head cost.
    ctx_heads = []
    for h in range(H):
        q_h = qkv[:, :, h * dk:(h + 1) * dk]                    # (TB, T, dk)
        k_h = qkv[:, :, D + h * dk:D + (h + 1) * dk]
        v_h = qkv[:, :, 2 * D + h * dk:2 * D + (h + 1) * dk]
        s = jnp.einsum('bte,bse->bts', q_h, k_h,
                       preferred_element_type=jnp.float32) * scale
        s = s - jnp.max(s, axis=-1, keepdims=True)
        p = jnp.exp(s)
        inv = pl.reciprocal(jnp.sum(p, axis=-1, keepdims=True), approx=True)
        attn = p * inv
        ctx_heads.append(
            jnp.einsum('bts,bse->bte', attn, v_h,
                       preferred_element_type=jnp.float32))
    ctx = jnp.concatenate(ctx_heads, axis=-1)                   # (TB, T, D)

    # TODO(synk): dropout layers are identity here (inference mode); training
    # dropout would use pltpu.prng_seed / pltpu.prng_random_bits.

    # ---- additive attention (query dim zero-padded to 128 lanes) ----
    qp = wa_ref.shape[1]
    ctxf = ctx.reshape(TB * T, D)
    proj = jnp.dot(ctxf, wa_ref[...],
                   preferred_element_type=jnp.float32) + ba_ref[...]
    temp = jnp.tanh(proj).reshape(TB, T, qp)                    # (TB, T, Qp)
    cand = jnp.sum(temp * qv_ref[...], axis=-1)                 # (TB, T)
    cand = cand - jnp.max(cand, axis=-1, keepdims=True)
    e = jnp.exp(cand)
    w = e * pl.reciprocal(jnp.sum(e, axis=-1, keepdims=True), approx=True)
    out = jnp.sum(w[:, :, None] * ctx, axis=1)                  # (TB, D)

    # TODO(synk): for D < 128 this final store is lane-masked; folding batch
    # rows into lanes needs a (TB, D)->(TB/4, 4D) relayout.  Output traffic is
    # <1/8 of the x traffic here, so it is intentionally left as-is.
    out_ref[...] = out.astype(out_ref.dtype)


def news_encoder(x, wq, wk, wv, wa, ba, qv, *, num_heads, block_b=128):
    """x: (B, T, D) embedded news titles; returns (B, D) float32."""
    B, T, D = x.shape
    assert D % num_heads == 0
    f32 = jnp.float32
    if x.dtype != f32:
        # TODO(synk): bf16 x for the DMA/MXU path (v5e/v6e bandwidth win) would
        # go here; kept f32 to match the f32 reference numerics.
        x = x.astype(f32)

    # Fused QKV weight, zero-padded to a full 128-lane output width.
    wqkv = jnp.concatenate([wq, wk, wv], axis=1).astype(f32)    # (D, 3D)
    qkv_cols = _round_up(3 * D, 128)
    wqkv = jnp.pad(wqkv, ((0, 0), (0, qkv_cols - 3 * D)))

    # Zero-pad additive-attention params to a full 128-lane query dim.
    qd = wa.shape[1]
    qp = _round_up(qd, 128)
    wa_p = jnp.pad(wa.astype(f32), ((0, 0), (0, qp - qd)))
    ba_p = jnp.pad(ba.reshape(1, -1).astype(f32), ((0, 0), (0, qp - qd)))
    qv_p = jnp.pad(qv.reshape(1, -1).astype(f32), ((0, 0), (0, qp - qd)))

    # Batch tiling: TB rows per grid step (multiple of 8 for sublane alignment).
    tb = _round_up(min(block_b, _round_up(B, 8)), 8)
    b_pad = _round_up(B, tb)
    if b_pad != B:
        x = jnp.pad(x, ((0, b_pad - B), (0, 0), (0, 0)))
    grid = (b_pad // tb,)

    out = pl.pallas_call(
        partial(news_encoder_kernel, num_heads=num_heads),
        out_shape=jax.ShapeDtypeStruct((b_pad, D), f32),
        grid=grid,
        in_specs=[
            pl.BlockSpec((tb, T, D), lambda i: (i, 0, 0)),       # x: pipelined
            pl.BlockSpec((D, qkv_cols), lambda i: (0, 0)),       # resident weights
            pl.BlockSpec((D, qp), lambda i: (0, 0)),
            pl.BlockSpec((1, qp), lambda i: (0, 0)),
            pl.BlockSpec((1, qp), lambda i: (0, 0)),
        ],
        out_specs=pl.BlockSpec((tb, D), lambda i: (i, 0)),
        compiler_params=pltpu.CompilerParams(
            dimension_semantics=("parallel",)),
    )(x, wqkv, wa_p, ba_p, qv_p)
    return out[:B]


def reference(x, wq, wk, wv, wa, ba, qv, *, num_heads):
    B, T, D = x.shape
    dk = D // num_heads
    q = (x @ wq).reshape(B, T, num_heads, dk)
    k = (x @ wk).reshape(B, T, num_heads, dk)
    v = (x @ wv).reshape(B, T, num_heads, dk)
    scores = jnp.einsum('bthd,bshd->bhts', q, k) / math.sqrt(dk)
    attn = jax.nn.softmax(scores, axis=-1)
    ctx = jnp.einsum('bhts,bshd->bthd', attn, v).reshape(B, T, D)
    temp = jnp.tanh(ctx @ wa + ba)
    w = jax.nn.softmax(temp @ qv, axis=-1)
    return jnp.einsum('bt,btd->bd', w, ctx)


if __name__ == "__main__":
    # Small config consistent with the module's __init__.
    num_words = 50
    word_embedding_dim = 32          # D
    num_attention_heads = 4          # H
    query_vector_dim = 16            # Qd
    batch = 2
    title_len = 8                    # T

    key = jax.random.PRNGKey(0)
    k_emb, k_q, k_k, k_v, k_wa, k_ba, k_qv, k_news = jax.random.split(key, 8)

    word_embedding = 0.1 * jax.random.normal(
        k_emb, (num_words, word_embedding_dim), dtype=jnp.float32)
    word_embedding = word_embedding.at[0].set(0.0)   # padding_idx=0

    wq = 0.1 * jax.random.normal(k_q, (word_embedding_dim, word_embedding_dim), jnp.float32)
    wk = 0.1 * jax.random.normal(k_k, (word_embedding_dim, word_embedding_dim), jnp.float32)
    wv = 0.1 * jax.random.normal(k_v, (word_embedding_dim, word_embedding_dim), jnp.float32)
    wa = 0.1 * jax.random.normal(k_wa, (word_embedding_dim, query_vector_dim), jnp.float32)
    ba = 0.1 * jax.random.normal(k_ba, (query_vector_dim,), jnp.float32)
    qv = jax.random.uniform(k_qv, (query_vector_dim,), jnp.float32, -0.1, 0.1)

    # Example input: token ids, with a couple of padding (0) tokens.
    news = jax.random.randint(k_news, (batch, title_len), 0, num_words, dtype=jnp.int32)
    news = news.at[:, -1].set(0)

    # Glue: embedding lookup + (identity) dropout in plain JAX.
    x = jnp.take(word_embedding, news, axis=0)       # (B, T, D)

    out = news_encoder(x, wq, wk, wv, wa, ba, qv, num_heads=num_attention_heads)
    out = jax.block_until_ready(out)

    ref = reference(x, wq, wk, wv, wa, ba, qv, num_heads=num_attention_heads)
    assert out.shape == (batch, word_embedding_dim)
    # Tolerance loosened slightly for pl.reciprocal(approx=True) softmax denoms.
    assert jnp.allclose(out, ref, atol=2e-3, rtol=2e-3), (out, ref)
    print("KERNEL_OK")
</pallas_src>

<mosaic_0001>
module attributes {stable_mosaic.version = 11 : i64} {
  func.func @news_encoder_kernel(%arg0: i32, %arg1: memref<8x8x32xf32, #tpu.memory_space<vmem>>, %arg2: memref<32x128xf32, #tpu.memory_space<vmem>>, %arg3: memref<32x128xf32, #tpu.memory_space<vmem>>, %arg4: memref<1x128xf32, #tpu.memory_space<vmem>>, %arg5: memref<1x128xf32, #tpu.memory_space<vmem>>, %arg6: memref<8x32xf32, #tpu.memory_space<vmem>>) attributes {dimension_semantics = [#tpu.dimension_semantics<parallel>], iteration_bounds = array<i64: 1>, scalar_prefetch = 0 : i64, scratch_operands = 0 : i64, tpu.core_type = #tpu.core_type<tc>, window_params = [{transform_indices = @transform_0, window_bounds = array<i64: 8, 8, 32>}, {pipeline_mode = #tpu.pipeline_mode<synchronous>, transform_indices = @transform_1, window_bounds = array<i64: 32, 128>}, {pipeline_mode = #tpu.pipeline_mode<synchronous>, transform_indices = @transform_2, window_bounds = array<i64: 32, 128>}, {pipeline_mode = #tpu.pipeline_mode<synchronous>, transform_indices = @transform_3, window_bounds = array<i64: 1, 128>}, {pipeline_mode = #tpu.pipeline_mode<synchronous>, transform_indices = @transform_4, window_bounds = array<i64: 1, 128>}, {transform_indices = @transform_5, window_bounds = array<i64: 8, 32>}]} {
    %c0 = arith.constant 0 : index
    %c0_0 = arith.constant 0 : index
    %c0_1 = arith.constant 0 : index
    %0 = vector.load %arg1[%c0, %c0_0, %c0_1] : memref<8x8x32xf32, #tpu.memory_space<vmem>>, vector<8x8x32xf32>
    %1 = vector.shape_cast %0 : vector<8x8x32xf32> to vector<64x32xf32>
    %c0_2 = arith.constant 0 : index
    %c0_3 = arith.constant 0 : index
    %2 = vector.load %arg2[%c0_2, %c0_3] : memref<32x128xf32, #tpu.memory_space<vmem>>, vector<32x128xf32>
    %cst = arith.constant dense<0.000000e+00> : vector<64x128xf32>
    %3 = tpu.matmul %1, %2, %cst {dimension_numbers = #tpu.dot_dimension_numbers<[1], [0], [0], [1], [0, 0, 1, 1], [], []>} : vector<64x32xf32>, vector<32x128xf32>, vector<64x128xf32> -> vector<64x128xf32>
    %4 = vector.shape_cast %3 : vector<64x128xf32> to vector<8x8x128xf32>
    %5 = vector.extract_strided_slice %4 {offsets = [0, 0, 0], sizes = [8, 8, 8], strides = [1, 1, 1]} : vector<8x8x128xf32> to vector<8x8x8xf32>
    %6 = vector.extract_strided_slice %4 {offsets = [0, 0, 32], sizes = [8, 8, 8], strides = [1, 1, 1]} : vector<8x8x128xf32> to vector<8x8x8xf32>
    %7 = vector.extract_strided_slice %4 {offsets = [0, 0, 64], sizes = [8, 8, 8], strides = [1, 1, 1]} : vector<8x8x128xf32> to vector<8x8x8xf32>
    "tpu.trace_start"() <{level = 10 : i32, message = "bte,bse->bts"}> : () -> ()
    %cst_4 = arith.constant dense<0.000000e+00> : vector<8x8x8xf32>
    %8 = tpu.matmul %5, %6, %cst_4 {dimension_numbers = #tpu.dot_dimension_numbers<[2], [2], [1], [1], [0, 0, 0, 1, 1, 1], [0], [0]>} : vector<8x8x8xf32>, vector<8x8x8xf32>, vector<8x8x8xf32> -> vector<8x8x8xf32>
    "tpu.trace_stop"() : () -> ()
    %cst_5 = arith.constant 0.353553385 : f32
    %9 = vector.broadcast %cst_5 : f32 to vector<8x8x8xf32>
    %10 = arith.mulf %8, %9 : vector<8x8x8xf32>
    %cst_6 = arith.constant dense<0xFF800000> : vector<8x8xf32>
    %11 = vector.multi_reduction <maximumf>, %10, %cst_6 [2] : vector<8x8x8xf32> to vector<8x8xf32>
    %12 = vector.shape_cast %11 : vector<8x8xf32> to vector<8x8x1xf32>
    %13 = vector.broadcast %12 : vector<8x8x1xf32> to vector<8x8x8xf32>
    %14 = arith.subf %10, %13 : vector<8x8x8xf32>
    %15 = math.exp %14 : vector<8x8x8xf32>
    %cst_7 = arith.constant dense<0.000000e+00> : vector<8x8xf32>
    %16 = vector.multi_reduction <add>, %15, %cst_7 [2] : vector<8x8x8xf32> to vector<8x8xf32>
    %17 = vector.shape_cast %16 : vector<8x8xf32> to vector<8x8x1xf32>
    %18 = tpu.reciprocal %17 {approx = true} : vector<8x8x1xf32> -> vector<8x8x1xf32>
    %19 = vector.broadcast %18 : vector<8x8x1xf32> to vector<8x8x8xf32>
    %20 = arith.mulf %15, %19 : vector<8x8x8xf32>
    "tpu.trace_start"() <{level = 10 : i32, message = "bts,bse->bte"}> : () -> ()
    %cst_8 = arith.constant dense<0.000000e+00> : vector<8x8x8xf32>
    %21 = tpu.matmul %20, %7, %cst_8 {dimension_numbers = #tpu.dot_dimension_numbers<[2], [1], [1], [2], [0, 0, 0, 1, 1, 2], [0], [0]>} : vector<8x8x8xf32>, vector<8x8x8xf32>, vector<8x8x8xf32> -> vector<8x8x8xf32>
    "tpu.trace_stop"() : () -> ()
    %22 = vector.extract_strided_slice %4 {offsets = [0, 0, 8], sizes = [8, 8, 8], strides = [1, 1, 1]} : vector<8x8x128xf32> to vector<8x8x8xf32>
    %23 = vector.extract_strided_slice %4 {offsets = [0, 0, 40], sizes = [8, 8, 8], strides = [1, 1, 1]} : vector<8x8x128xf32> to vector<8x8x8xf32>
    %24 = vector.extract_strided_slice %4 {offsets = [0, 0, 72], sizes = [8, 8, 8], strides = [1, 1, 1]} : vector<8x8x128xf32> to vector<8x8x8xf32>
    "tpu.trace_start"() <{level = 10 : i32, message = "bte,bse->bts"}> : () -> ()
    %cst_9 = arith.constant dense<0.000000e+00> : vector<8x8x8xf32>
    %25 = tpu.matmul %22, %23, %cst_9 {dimension_numbers = #tpu.dot_dimension_numbers<[2], [2], [1], [1], [0, 0, 0, 1, 1, 1], [0], [0]>} : vector<8x8x8xf32>, vector<8x8x8xf32>, vector<8x8x8xf32> -> vector<8x8x8xf32>
    "tpu.trace_stop"() : () -> ()
    %cst_10 = arith.constant 0.353553385 : f32
    %26 = vector.broadcast %cst_10 : f32 to vector<8x8x8xf32>
    %27 = arith.mulf %25, %26 : vector<8x8x8xf32>
    %cst_11 = arith.constant dense<0xFF800000> : vector<8x8xf32>
    %28 = vector.multi_reduction <maximumf>, %27, %cst_11 [2] : vector<8x8x8xf32> to vector<8x8xf32>
    %29 = vector.shape_cast %28 : vector<8x8xf32> to vector<8x8x1xf32>
    %30 = vector.broadcast %29 : vector<8x8x1xf32> to vector<8x8x8xf32>
    %31 = arith.subf %27, %30 : vector<8x8x8xf32>
    %32 = math.exp %31 : vector<8x8x8xf32>
    %cst_12 = arith.constant dense<0.000000e+00> : vector<8x8xf32>
    %33 = vector.multi_reduction <add>, %32, %cst_12 [2] : vector<8x8x8xf32> to vector<8x8xf32>
    %34 = vector.shape_cast %33 : vector<8x8xf32> to vector<8x8x1xf32>
    %35 = tpu.reciprocal %34 {approx = true} : vector<8x8x1xf32> -> vector<8x8x1xf32>
    %36 = vector.broadcast %35 : vector<8x8x1xf32> to vector<8x8x8xf32>
    %37 = arith.mulf %32, %36 : vector<8x8x8xf32>
    "tpu.trace_start"() <{level = 10 : i32, message = "bts,bse->bte"}> : () -> ()
    %cst_13 = arith.constant dense<0.000000e+00> : vector<8x8x8xf32>
    %38 = tpu.matmul %37, %24, %cst_13 {dimension_numbers = #tpu.dot_dimension_numbers<[2], [1], [1], [2], [0, 0, 0, 1, 1, 2], [0], [0]>} : vector<8x8x8xf32>, vector<8x8x8xf32>, vector<8x8x8xf32> -> vector<8x8x8xf32>
    "tpu.trace_stop"() : () -> ()
    %39 = vector.extract_strided_slice %4 {offsets = [0, 0, 16], sizes = [8, 8, 8], strides = [1, 1, 1]} : vector<8x8x128xf32> to vector<8x8x8xf32>
    %40 = vector.extract_strided_slice %4 {offsets = [0, 0, 48], sizes = [8, 8, 8], strides = [1, 1, 1]} : vector<8x8x128xf32> to vector<8x8x8xf32>
    %41 = vector.extract_strided_slice %4 {offsets = [0, 0, 80], sizes = [8, 8, 8], strides = [1, 1, 1]} : vector<8x8x128xf32> to vector<8x8x8xf32>
    "tpu.trace_start"() <{level = 10 : i32, message = "bte,bse->bts"}> : () -> ()
    %cst_14 = arith.constant dense<0.000000e+00> : vector<8x8x8xf32>
    %42 = tpu.matmul %39, %40, %cst_14 {dimension_numbers = #tpu.dot_dimension_numbers<[2], [2], [1], [1], [0, 0, 0, 1, 1, 1], [0], [0]>} : vector<8x8x8xf32>, vector<8x8x8xf32>, vector<8x8x8xf32> -> vector<8x8x8xf32>
    "tpu.trace_stop"() : () -> ()
    %cst_15 = arith.constant 0.353553385 : f32
    %43 = vector.broadcast %cst_15 : f32 to vector<8x8x8xf32>
    %44 = arith.mulf %42, %43 : vector<8x8x8xf32>
    %cst_16 = arith.constant dense<0xFF800000> : vector<8x8xf32>
    %45 = vector.multi_reduction <maximumf>, %44, %cst_16 [2] : vector<8x8x8xf32> to vector<8x8xf32>
    %46 = vector.shape_cast %45 : vector<8x8xf32> to vector<8x8x1xf32>
    %47 = vector.broadcast %46 : vector<8x8x1xf32> to vector<8x8x8xf32>
    %48 = arith.subf %44, %47 : vector<8x8x8xf32>
    %49 = math.exp %48 : vector<8x8x8xf32>
    %cst_17 = arith.constant dense<0.000000e+00> : vector<8x8xf32>
    %50 = vector.multi_reduction <add>, %49, %cst_17 [2] : vector<8x8x8xf32> to vector<8x8xf32>
    %51 = vector.shape_cast %50 : vector<8x8xf32> to vector<8x8x1xf32>
    %52 = tpu.reciprocal %51 {approx = true} : vector<8x8x1xf32> -> vector<8x8x1xf32>
    %53 = vector.broadcast %52 : vector<8x8x1xf32> to vector<8x8x8xf32>
    %54 = arith.mulf %49, %53 : vector<8x8x8xf32>
    "tpu.trace_start"() <{level = 10 : i32, message = "bts,bse->bte"}> : () -> ()
    %cst_18 = arith.constant dense<0.000000e+00> : vector<8x8x8xf32>
    %55 = tpu.matmul %54, %41, %cst_18 {dimension_numbers = #tpu.dot_dimension_numbers<[2], [1], [1], [2], [0, 0, 0, 1, 1, 2], [0], [0]>} : vector<8x8x8xf32>, vector<8x8x8xf32>, vector<8x8x8xf32> -> vector<8x8x8xf32>
    "tpu.trace_stop"() : () -> ()
    %56 = vector.extract_strided_slice %4 {offsets = [0, 0, 24], sizes = [8, 8, 8], strides = [1, 1, 1]} : vector<8x8x128xf32> to vector<8x8x8xf32>
    %57 = vector.extract_strided_slice %4 {offsets = [0, 0, 56], sizes = [8, 8, 8], strides = [1, 1, 1]} : vector<8x8x128xf32> to vector<8x8x8xf32>
    %58 = vector.extract_strided_slice %4 {offsets = [0, 0, 88], sizes = [8, 8, 8], strides = [1, 1, 1]} : vector<8x8x128xf32> to vector<8x8x8xf32>
    "tpu.trace_start"() <{level = 10 : i32, message = "bte,bse->bts"}> : () -> ()
    %cst_19 = arith.constant dense<0.000000e+00> : vector<8x8x8xf32>
    %59 = tpu.matmul %56, %57, %cst_19 {dimension_numbers = #tpu.dot_dimension_numbers<[2], [2], [1], [1], [0, 0, 0, 1, 1, 1], [0], [0]>} : vector<8x8x8xf32>, vector<8x8x8xf32>, vector<8x8x8xf32> -> vector<8x8x8xf32>
    "tpu.trace_stop"() : () -> ()
    %cst_20 = arith.constant 0.353553385 : f32
    %60 = vector.broadcast %cst_20 : f32 to vector<8x8x8xf32>
    %61 = arith.mulf %59, %60 : vector<8x8x8xf32>
    %cst_21 = arith.constant dense<0xFF800000> : vector<8x8xf32>
    %62 = vector.multi_reduction <maximumf>, %61, %cst_21 [2] : vector<8x8x8xf32> to vector<8x8xf32>
    %63 = vector.shape_cast %62 : vector<8x8xf32> to vector<8x8x1xf32>
    %64 = vector.broadcast %63 : vector<8x8x1xf32> to vector<8x8x8xf32>
    %65 = arith.subf %61, %64 : vector<8x8x8xf32>
    %66 = math.exp %65 : vector<8x8x8xf32>
    %cst_22 = arith.constant dense<0.000000e+00> : vector<8x8xf32>
    %67 = vector.multi_reduction <add>, %66, %cst_22 [2] : vector<8x8x8xf32> to vector<8x8xf32>
    %68 = vector.shape_cast %67 : vector<8x8xf32> to vector<8x8x1xf32>
    %69 = tpu.reciprocal %68 {approx = true} : vector<8x8x1xf32> -> vector<8x8x1xf32>
    %70 = vector.broadcast %69 : vector<8x8x1xf32> to vector<8x8x8xf32>
    %71 = arith.mulf %66, %70 : vector<8x8x8xf32>
    "tpu.trace_start"() <{level = 10 : i32, message = "bts,bse->bte"}> : () -> ()
    %cst_23 = arith.constant dense<0.000000e+00> : vector<8x8x8xf32>
    %72 = tpu.matmul %71, %58, %cst_23 {dimension_numbers = #tpu.dot_dimension_numbers<[2], [1], [1], [2], [0, 0, 0, 1, 1, 2], [0], [0]>} : vector<8x8x8xf32>, vector<8x8x8xf32>, vector<8x8x8xf32> -> vector<8x8x8xf32>
    "tpu.trace_stop"() : () -> ()
    %73 = tpu.concatenate %21, %38, %55, %72 in 2 : vector<8x8x8xf32>, vector<8x8x8xf32>, vector<8x8x8xf32>, vector<8x8x8xf32> -> vector<8x8x32xf32>
    %74 = vector.shape_cast %73 : vector<8x8x32xf32> to vector<64x32xf32>
    %c0_24 = arith.constant 0 : index
    %c0_25 = arith.constant 0 : index
    %75 = vector.load %arg3[%c0_24, %c0_25] : memref<32x128xf32, #tpu.memory_space<vmem>>, vector<32x128xf32>
    %cst_26 = arith.constant dense<0.000000e+00> : vector<64x128xf32>
    %76 = tpu.matmul %74, %75, %cst_26 {dimension_numbers = #tpu.dot_dimension_numbers<[1], [0], [0], [1], [0, 0, 1, 1], [], []>} : vector<64x32xf32>, vector<32x128xf32>, vector<64x128xf32> -> vector<64x128xf32>
    %c0_27 = arith.constant 0 : index
    %c0_28 = arith.constant 0 : index
    %77 = vector.load %arg4[%c0_27, %c0_28] : memref<1x128xf32, #tpu.memory_space<vmem>>, vector<1x128xf32>
    %78 = vector.broadcast %77 : vector<1x128xf32> to vector<64x128xf32>
    %79 = arith.addf %76, %78 : vector<64x128xf32>
    %80 = math.tanh %79 : vector<64x128xf32>
    %81 = vector.shape_cast %80 : vector<64x128xf32> to vector<8x8x128xf32>
    %c0_29 = arith.constant 0 : index
    %c0_30 = arith.constant 0 : index
    %82 = vector.load %arg5[%c0_29, %c0_30] : memref<1x128xf32, #tpu.memory_space<vmem>>, vector<1x128xf32>
    %83 = vector.shape_cast %82 : vector<1x128xf32> to vector<1x1x128xf32>
    %84 = vector.broadcast %83 : vector<1x1x128xf32> to vector<8x8x128xf32>
    %85 = arith.mulf %81, %84 : vector<8x8x128xf32>
    %cst_31 = arith.constant dense<0.000000e+00> : vector<8x8xf32>
    %86 = vector.multi_reduction <add>, %85, %cst_31 [2] : vector<8x8x128xf32> to vector<8x8xf32>
    %cst_32 = arith.constant dense<0xFF800000> : vector<8xf32>
    %87 = vector.multi_reduction <maximumf>, %86, %cst_32 [1] : vector<8x8xf32> to vector<8xf32>
    %88 = vector.shape_cast %87 : vector<8xf32> to vector<8x1xf32>
    %89 = vector.broadcast %88 : vector<8x1xf32> to vector<8x8xf32>
    %90 = arith.subf %86, %89 : vector<8x8xf32>
    %91 = math.exp %90 : vector<8x8xf32>
    %cst_33 = arith.constant dense<0.000000e+00> : vector<8xf32>
    %92 = vector.multi_reduction <add>, %91, %cst_33 [1] : vector<8x8xf32> to vector<8xf32>
    %93 = vector.shape_cast %92 : vector<8xf32> to vector<8x1xf32>
    %94 = tpu.reciprocal %93 {approx = true} : vector<8x1xf32> -> vector<8x1xf32>
    %95 = vector.broadcast %94 : vector<8x1xf32> to vector<8x8xf32>
    %96 = arith.mulf %91, %95 : vector<8x8xf32>
    %97 = vector.shape_cast %96 : vector<8x8xf32> to vector<8x8x1xf32>
    %98 = vector.broadcast %97 : vector<8x8x1xf32> to vector<8x8x32xf32>
    %99 = arith.mulf %98, %73 : vector<8x8x32xf32>
    %cst_34 = arith.constant dense<0.000000e+00> : vector<8x32xf32>
    %100 = vector.multi_reduction <add>, %99, %cst_34 [1] : vector<8x8x32xf32> to vector<8x32xf32>
    %c0_35 = arith.constant 0 : index
    %c0_36 = arith.constant 0 : index
    %101 = vector.load %arg6[%c0_35, %c0_36] : memref<8x32xf32, #tpu.memory_space<vmem>>, vector<8x32xf32>
    tpu.vector_store %arg6[%c0_35, %c0_36], %100 {strides = array<i32>} : memref<8x32xf32, #tpu.memory_space<vmem>>, vector<8x32xf32>,
    return
  }
  func.func @transform_0(%arg0: i32) -> (i32, i32, i32) {
    %c0_i32 = arith.constant 0 : i32
    %c0_i32_0 = arith.constant 0 : i32
    %c0_i32_1 = arith.constant 0 : i32
    return %arg0, %c0_i32, %c0_i32_0 : i32, i32, i32
  }
  func.func @transform_1(%arg0: i32) -> (i32, i32) {
    %c0_i32 = arith.constant 0 : i32
    %c0_i32_0 = arith.constant 0 : i32
    %c0_i32_1 = arith.constant 0 : i32
    return %c0_i32, %c0_i32_0 : i32, i32
  }
  func.func @transform_2(%arg0: i32) -> (i32, i32) {
    %c0_i32 = arith.constant 0 : i32
    %c0_i32_0 = arith.constant 0 : i32
    %c0_i32_1 = arith.constant 0 : i32
    return %c0_i32, %c0_i32_0 : i32, i32
  }
  func.func @transform_3(%arg0: i32) -> (i32, i32) {
    %c0_i32 = arith.constant 0 : i32
    %c0_i32_0 = arith.constant 0 : i32
    %c0_i32_1 = arith.constant 0 : i32
    return %c0_i32, %c0_i32_0 : i32, i32
  }
  func.func @transform_4(%arg0: i32) -> (i32, i32) {
    %c0_i32 = arith.constant 0 : i32
    %c0_i32_0 = arith.constant 0 : i32
    %c0_i32_1 = arith.constant 0 : i32
    return %c0_i32, %c0_i32_0 : i32, i32
  }
  func.func @transform_5(%arg0: i32) -> (i32, i32) {
    %c0_i32 = arith.constant 0 : i32
    %c0_i32_0 = arith.constant 0 : i32
    return %arg0, %c0_i32 : i32, i32
  }
}

</mosaic_0001>

<bundles_post_ra>
// kernel: tpu_custom_call.1
= control target key start
LH: loop header
LB: loop body
LE: loop exit
PB: predicated region body
PF: predicated region fallthrough
CT: control target
= control target key end

     0   :  { %10 = vsyncpa [#allocation3], 0  ;;  %s8231_s0 = inlined_call_operand.hbm [shape: f32[8,8,32], index: 0, kind: input, shape index: {}]   ;;  %s8232_s1 = inlined_call_operand.hbm [shape: f32[32,128], index: 1, kind: input, shape index: {}]   ;;  %s8233_s2 = inlined_call_operand.hbm [shape: f32[32,128], index: 2, kind: input, shape index: {}]   ;;  %s8234_s3 = inlined_call_operand.vmem [shape: f32[1,128], index: 3, kind: input, shape index: {}]   ;;  %s8235_s4 = inlined_call_operand.vmem [shape: f32[1,128], index: 4, kind: input, shape index: {}]   ;;  %s8236_s5 = inlined_call_operand.hbm [shape: f32[8,32], index: 5, kind: output, shape index: {}]  }
   0x1   :  { %11 = vsyncpa [#allocation6], 0 }
   0x2   :  { %12 = vsyncpa [#allocation4], 0  ;;  %s7119_s18 = smov [#allocation5]   ;;  %s7120_s20 = smov [#allocation2]  }
   0x3   :  { %s30_s19 = sshll.u32 %s7119_s18, 4  ;;  %s18_s21 = sshll.u32 %s7120_s20, 4  ;;  %s31_s19 = int_to_ptr.vmem [resolvable:$true] %s30_s19  ;;  %s7171_s21 = int_to_ptr.vmem [resolvable:$true] %s18_s21 }
   0x4   :  { %s7025_s24 = scalar_lea.hbm %s8232_s1, 512 }
   0x5   :  { %p7026_p0 = scmp.ne.s32.totalorder %s8232_s1, %s7025_s24  ;;  %p7029_p1 = scmp.lt.u32.totalorder %s7025_s24, %s8232_s1 }
   0x7   :  { %p7031_p2 = pnand %p7029_p1, %p7026_p0 }
   0x9   :  { %7034 = shalt.err (!%p7031_p2)
}
   0xa   :  { %s7035_s29 = scalar_lea.vmem %s31_s19, 512  ;;  %p7040_p4 = scmp.lt.s32.totalorder %s31_s19, %s31_s19 }
   0xb   :  { %p7036_p3 = scmp.ne.s32.totalorder %s31_s19, %s7035_s29  ;;  %p7041_p5 = scmp.lt.s32.totalorder %s7035_s29, %s7035_s29 }
   0xd   :  { %p7042_p6 = por %p7041_p5, %p7040_p4 }
   0xf   :  { %p7043_p7 = pnand %p7042_p6, %p7036_p3 }
  0x11   :  { %7046 = shalt.err (!%p7043_p7)
}
  0x12   :  { %s7121_s30 = smov 128   ;;  %s7122_s6 = smov 8  }
  0x13   :  { %36 = dma.hbm_to_vmem [thread:$0]  %s8232_s1, 512, %s31_s19, [#allocation6], %s7121_s30, %s7121_s30, %s7122_s6  }
  0x14   :  { %s7047_s11 = scalar_lea.hbm %s8231_s0, 1024 }
  0x15   :  { %p7048_p8 = scmp.ne.s32.totalorder %s8231_s0, %s7047_s11  ;;  %p7051_p9 = scmp.lt.u32.totalorder %s7047_s11, %s8231_s0 }
  0x17   :  { %p7053_p10 = pnand %p7051_p9, %p7048_p8 }
  0x19   :  { %7056 = shalt.err (!%p7053_p10)
}
  0x1a   :  { %s7057_s16 = scalar_lea.vmem %s7171_s21, 1024  ;;  %p7062_p12 = scmp.lt.s32.totalorder %s7171_s21, %s7171_s21 }
  0x1b   :  { %p7058_p11 = scmp.ne.s32.totalorder %s7171_s21, %s7057_s16  ;;  %p7063_p13 = scmp.lt.s32.totalorder %s7057_s16, %s7057_s16 }
  0x1d   :  { %p7064_p0 = por %p7063_p13, %p7062_p12 }
  0x1f   :  { %p7065_p1 = pnand %p7064_p0, %p7058_p11 }
  0x21   :  { %7068 = shalt.err (!%p7065_p1)
}
  0x22   :  { %24 = dma.hbm_to_vmem [thread:$0]  %s8231_s0, 1024, %s7171_s21, [#allocation3], %s7121_s30, %s7121_s30, %s7122_s6  }
  0x23   :  { %s7123_s18 = smov [#allocation7]   ;;  %s7069_s23 = scalar_lea.hbm %s8233_s2, 512 }
  0x24   :  { %s42_s19 = sshll.u32 %s7123_s18, 4  ;;  %p7070_p2 = scmp.ne.s32.totalorder %s8233_s2, %s7069_s23  ;;  %s43_s19 = int_to_ptr.vmem [resolvable:$true] %s42_s19 }
  0x25   :  { %p7073_p3 = scmp.lt.u32.totalorder %s7069_s23, %s8233_s2 }
  0x27   :  { %p7075_p4 = pnand %p7073_p3, %p7070_p2 }
  0x29   :  { %7078 = shalt.err (!%p7075_p4)
}
  0x2a   :  { %s7079_s28 = scalar_lea.vmem %s43_s19, 512  ;;  %p7084_p6 = scmp.lt.s32.totalorder %s43_s19, %s43_s19 }
  0x2b   :  { %p7080_p5 = scmp.ne.s32.totalorder %s43_s19, %s7079_s28  ;;  %p7085_p7 = scmp.lt.s32.totalorder %s7079_s28, %s7079_s28 }
  0x2d   :  { %p7086_p8 = por %p7085_p7, %p7084_p6 }
  0x2f   :  { %p7087_p9 = pnand %p7086_p8, %p7080_p5 }
  0x31   :  { %7090 = shalt.err (!%p7087_p9)
}
  0x32   :  { %48 = dma.hbm_to_vmem [thread:$0]  %s8233_s2, 512, %s43_s19, [#allocation6], %s7121_s30, %s7121_s30, %s7122_s6  }
  0x33   :  { %7113 = dma.done.wait [#allocation3], 1024  }
  0x34   :  { %7114 = vsyncadd [#allocation3], 4294966272 }
  0x35   :  { %7115 = dma.done.wait [#allocation6], 1024  }
  0x36   :  { %7116 = vsyncadd [#allocation6], 4294966272  ;;  %vm74_vm0 = vcmask 261120   ;;  %v70_v0 = vld [vmem:[#allocation5] sm:$0xff]  ;;  %v71_v1 = vld [vmem:[#allocation5 + $0x8] sm:$0xff]  ;;  %v7124_v14 = vmov 0.0  }
  0x37   :  { %v72_v2 = vld [vmem:[#allocation5 + $0x10] sm:$0xff]  ;;  %v6823_v3 = vpack.c.bf16 %v71_v1, %v70_v0  ;;  %v73_v4 = vld [vmem:[#allocation5 + $0x18] sm:$0xff]  ;;  %v62_v5 = vld [vmem:[#allocation2] sm:$0xff]  ;;  %6493 = vmatprep.subr.mxu1 %v7124_v14  ;;  %vm7125_vm1 = vmmov 0   ;;  %s7126_s2 = smov 96   ;;  %vm207_vm2 = vcmask 64512  }
  0x38   :  { %v6827_v6 = vpack.c.bf16 %v73_v4, %v72_v2  ;;  %6471 = vmatprep.mubr.msk.f32.mxu0 %vm74_vm0, %v62_v5  ;;  %v63_v7 = vld [vmem:[#allocation2 + $0x8] sm:$0xff]  ;;  %v64_v8 = vld [vmem:[#allocation2 + $0x10] sm:$0xff]  ;;  %v65_v9 = vld [vmem:[#allocation2 + $0x18] sm:$0xff]  ;;  %6495 = vmatprep.mubr.msk.f32.mxu1 %vm7125_vm1, %v7124_v14  ;;  %s7127_s29 = smov 64   ;;  %s7128_s30 = smov 88   ;;  %vm5622_vm3 = vcmask 195584  }
  0x39   :  { %6824 = vmatprep.subr.bf16.mxu0 %v6823_v3  ;;  %v66_v10 = vld [vmem:[#allocation2 + $0x20] sm:$0xff]  ;;  %v67_v11 = vld [vmem:[#allocation2 + $0x28] sm:$0xff]  ;;  %v68_v12 = vld [vmem:[#allocation2 + $0x30] sm:$0xff]  ;;  %s7129_s7 = smov 120   ;;  %s7130_s8 = smov 56   ;;  %vm5613_vm4 = vcmask 130048  }
  0x3a   :  { %6826 = vmatpush3.bf16.msra.mxu0 %v6823_v3  ;;  %v69_v13 = vld [vmem:[#allocation2 + $0x38] sm:$0xff]  ;;  %s7131_s9 = smov 80   ;;  %s7132_s10 = smov 112   ;;  %vm5852_vm5 = vcmask 1041409   ;;  %vm5854_vm6 = vcmask 1042434   ;;  %vm5856_vm7 = vcmask 1043459  }
  0x3b   :  { %6828 = vmatprep.subr.bf16.mxu0 %v6827_v6  ;;  %s7133_s11 = smov 48   ;;  %s7134_s12 = smov 72   ;;  %vm5858_vm8 = vcmask 1044484   ;;  %vm5860_vm9 = vcmask 1045509   ;;  %vm5862_vm10 = vcmask 1046534   ;;  %vm5864_vm11 = vcmask 1047559  }
  0x3c   :  { %s7135_s13 = smov 104   ;;  %s7136_s14 = smov 40  }
  0x3d   :  { %s7137_s15 = smov 16  }
  0x3e   :  { %6830 = vmatpush3.bf16.msra.mxu0 %v6827_v6 }
  0x3f   :  { %6483 = vmatprep.subr.mxu0 %v7124_v14 }
  0x41   :  { %6472 = vmatmul.mubr.msk.f32.vlgmr.msra.gmra.mrb[0].mxu0 %vm74_vm0, %v63_v7 }
  0x42   :  { %6474 = vmatprep.mubr.msk.f32.mxu0 %vm74_vm0, %v64_v8 }
  0x45   :  { %6475 = vmatmul.mubr.msk.f32.gmra.mrb[2].mxu0 %vm74_vm0, %v65_v9 }
  0x46   :  { %6477 = vmatprep.mubr.msk.f32.mxu0 %vm74_vm0, %v66_v10 }
  0x49   :  { %6478 = vmatmul.mubr.msk.f32.gmra.mrb[4].mxu0 %vm74_vm0, %v67_v11 }
  0x4a   :  { %6480 = vmatprep.mubr.msk.f32.mxu0 %vm74_vm0, %v68_v12 }
  0x4d   :  { %6481 = vmatmul.mubr.msk.f32.gmra.mrb[6].mxu0 %vm74_vm0, %v69_v13 }
  0x4e   :  { %6485 = vmatprep.mubr.msk.f32.mxu0 %vm7125_vm1, %v7124_v14 }
 0x114   :  { %v7237_v15 = vpop.f32.mrb[0].mxu0 }
 0x115   :  { %283 = vrot.lane.b32.xlu1 %v7237_v15, %s7126_s2  ;;  %v7240_v16 = vpop.f32.mrb[1].mxu0 }
 0x116   :  { %205 = vrot.lane.b32.xlu0 %v7240_v16, %s7126_s2 }
 0x118   :  { %v7243_v17 = vpop.f32.mrb[2].mxu0 }
 0x119   :  { %v7245_v18 = vpop.f32.mrb[3].mxu0  ;;  %437 = vrot.lane.b32.xlu1 %v7243_v17, %s7126_s2 }
 0x11a   :  { %360 = vrot.lane.b32.xlu0 %v7245_v18, %s7126_s2 }
 0x11c   :  { %v7249_v19 = vpop.f32.mrb[4].mxu0 }
 0x11d   :  { %591 = vrot.lane.b32.xlu1 %v7249_v19, %s7126_s2  ;;  %v7252_v20 = vpop.f32.mrb[5].mxu0 }
 0x11e   :  { %514 = vrot.lane.b32.xlu0 %v7252_v20, %s7126_s2 }
 0x120   :  { %v7255_v21 = vpop.f32.mrb[6].mxu0 }
 0x121   :  { %745 = vrot.lane.b32.xlu1 %v7255_v21, %s7126_s2  ;;  %v7258_v22 = vpop.f32.mrb[7].mxu0 }
 0x122   :  { %668 = vrot.lane.b32.xlu0 %v7258_v22, %s7126_s2 }
 0x187   :  { %v284_v23 = vpop.permute.xlu1 %283 }
 0x188   :  { %v206_v24 = vpop.permute.xlu0 %205 }
 0x189   :  { %6484 = vmatpush3.xpose.msk.msra.mxu0 %vm207_vm2, %v206_v24 }
 0x18a   :  { %6488 = vmatprep.subr.mxu0 %v7124_v14 }
 0x18b   :  { %v438_v25 = vpop.permute.xlu1 %437 }
 0x18c   :  { %6486 = vmatmul.mubr.msk.f32.vlgmr.msra.gmra.mrb[8].mxu0 %vm207_vm2, %v7240_v16  ;;  %v361_v26 = vpop.permute.xlu0 %360 }
 0x18d   :  { %6489 = vmatpush3.xpose.msk.msra.mxu0 %vm207_vm2, %v284_v23  ;;  %6494 = vmatpush3.xpose.msk.msra.mxu1 %vm207_vm2, %v361_v26 }
 0x18e   :  { %6490 = vmatprep.mubr.msk.f32.mxu0 %vm7125_vm1, %v7124_v14  ;;  %6498 = vmatprep.subr.mxu1 %v7124_v14 }
 0x18f   :  { %6508 = vmatprep.subr.mxu0 %v7124_v14  ;;  %v592_v27 = vpop.permute.xlu1 %591 }
 0x190   :  { %6491 = vmatmul.mubr.msk.f32.vlgmr.msra.gmra.mrb[10].mxu0 %vm207_vm2, %v7237_v15  ;;  %6496 = vmatmul.mubr.msk.f32.vlgmr.msra.gmra.mrb[0].mxu1 %vm207_vm2, %v7245_v18  ;;  %v515_v28 = vpop.permute.xlu0 %514 }
 0x191   :  { %6499 = vmatpush3.xpose.msk.msra.mxu1 %vm207_vm2, %v438_v25  ;;  %6509 = vmatpush3.xpose.msk.msra.mxu0 %vm207_vm2, %v592_v27 }
 0x192   :  { %6500 = vmatprep.mubr.msk.f32.mxu1 %vm7125_vm1, %v7124_v14  ;;  %6510 = vmatprep.mubr.msk.f32.mxu0 %vm7125_vm1, %v7124_v14 }
 0x193   :  { %6503 = vmatprep.subr.mxu1 %v7124_v14  ;;  %6518 = vmatprep.subr.mxu0 %v7124_v14  ;;  %v746_v29 = vpop.permute.xlu1 %745 }
 0x194   :  { %6501 = vmatmul.mubr.msk.f32.vlgmr.msra.gmra.mrb[2].mxu1 %vm207_vm2, %v7243_v17  ;;  %6511 = vmatmul.mubr.msk.f32.vlgmr.msra.gmra.mrb[12].mxu0 %vm207_vm2, %v7249_v19  ;;  %v669_v30 = vpop.permute.xlu0 %668 }
 0x195   :  { %6504 = vmatpush3.xpose.msk.msra.mxu1 %vm207_vm2, %v515_v28  ;;  %6505 = vmatprep.mubr.msk.f32.mxu1 %vm7125_vm1, %v7124_v14 }
 0x196   :  { %6519 = vmatpush3.xpose.msk.msra.mxu0 %vm207_vm2, %v746_v29  ;;  %6520 = vmatprep.mubr.msk.f32.mxu0 %vm7125_vm1, %v7124_v14 }
 0x197   :  { %6513 = vmatprep.subr.mxu1 %v7124_v14  ;;  %6528 = vmatprep.subr.mxu0 %v7124_v14 }
 0x198   :  { %6506 = vmatmul.mubr.msk.f32.vlgmr.msra.gmra.mrb[4].mxu1 %vm207_vm2, %v7252_v20 }
 0x199   :  { %6521 = vmatmul.mubr.msk.f32.vlgmr.msra.gmra.mrb[14].mxu0 %vm207_vm2, %v7255_v21  ;;  %6514 = vmatpush3.xpose.msk.msra.mxu1 %vm207_vm2, %v669_v30 }
 0x19a   :  { %6515 = vmatprep.mubr.msk.f32.mxu1 %vm7125_vm1, %v7124_v14  ;;  %6523 = vmatprep.subr.mxu1 %v7124_v14 }
 0x19b   :  { %6530 = vmatprep.mubr.msk.f32.mxu0 %vm7125_vm1, %v7124_v14 }
 0x19c   :  { %6516 = vmatmul.mubr.msk.f32.vlgmr.msra.gmra.mrb[6].mxu1 %vm207_vm2, %v7258_v22 }
 0x19d   :  { %6525 = vmatprep.mubr.msk.f32.mxu1 %vm7125_vm1, %v7124_v14 }
 0x25f   :  { %v278_v31 = vpop.f32.mrb[8].mxu0 }
 0x260   :  { %v7309_v32 = vmul.f32 0.35355338, %v278_v31  ;;  %v6487_v33 = vpop.f32.mrb[9].mxu0 }
 0x262   :  { %v829_v34 = vsel %vm207_vm2, %v7309_v32, -inf }
 0x263   :  { %v432_v35 = vpop.f32.mrb[0].mxu1  ;;  %830 = vmax.xlane.f32.xlu0 %v829_v34  ;;  %v355_v36 = vpop.f32.mrb[10].mxu0 }
 0x264   :  { %v7313_v37 = vmul.f32 0.35355338, %v432_v35  ;;  %v822_v38 = vmul.f32 0.35355338, %v355_v36  ;;  %v6492_v39 = vpop.f32.mrb[11].mxu0  ;;  %v6497_v40 = vpop.f32.mrb[1].mxu1 }
 0x266   :  { %v835_v41 = vsel %vm207_vm2, %v7313_v37, -inf  ;;  %v832_v42 = vsel %vm207_vm2, %v822_v38, -inf }
 0x267   :  { %v509_v43 = vpop.f32.mrb[2].mxu1  ;;  %836 = vmax.xlane.f32.xlu0 %v835_v41  ;;  %833 = vmax.xlane.f32.xlu1 %v832_v42  ;;  %v663_v44 = vpop.f32.mrb[12].mxu0 }
 0x268   :  { %v824_v45 = vmul.f32 0.35355338, %v509_v43  ;;  %v6502_v46 = vpop.f32.mrb[3].mxu1  ;;  %v6512_v47 = vpop.f32.mrb[13].mxu0  ;;  %v826_v48 = vmul.f32 0.35355338, %v663_v44 }
 0x26a   :  { %v838_v49 = vsel %vm207_vm2, %v824_v45, -inf  ;;  %v844_v54 = vsel %vm207_vm2, %v826_v48, -inf }
 0x26b   :  { %v586_v50 = vpop.f32.mrb[4].mxu1  ;;  %839 = vmax.xlane.f32.xlu0 %v838_v49 }
 0x26c   :  { %v6507_v51 = vpop.f32.mrb[5].mxu1  ;;  %v817_v52 = vpop.f32.mrb[14].mxu0  ;;  %v7327_v59 = vmul.f32 0.35355338, %v586_v50 }
 0x26d   :  { %v6522_v53 = vpop.f32.mrb[15].mxu0  ;;  %v828_v55 = vmul.f32 0.35355338, %v817_v52 }
 0x26e   :  { %v841_v60 = vsel %vm207_vm2, %v7327_v59, -inf }
 0x26f   :  { %845 = vmax.xlane.f32.xlu0 %v844_v54  ;;  %v740_v56 = vpop.f32.mrb[6].mxu1  ;;  %v850_v58 = vsel %vm207_vm2, %v828_v55, -inf }
 0x270   :  { %v6517_v57 = vpop.f32.mrb[7].mxu1  ;;  %v7343_v61 = vmul.f32 0.35355338, %v740_v56 }
 0x272   :  { %v847_v62 = vsel %vm207_vm2, %v7343_v61, -inf }
 0x273   :  { %851 = vmax.xlane.f32.xlu0 %v850_v58 }
 0x278   :  { %917 = vrot.lane.b32.xlu1 %v7240_v16, %s7127_s29 }
 0x289   :  { %993 = vrot.lane.b32.xlu0 %v7237_v15, %s7127_s29 }
 0x28d   :  { %1221 = vrot.lane.b32.xlu0 %v7252_v20, %s7127_s29 }
 0x291   :  { %1373 = vrot.lane.b32.xlu0 %v7258_v22, %s7127_s29 }
 0x295   :  { %1527 = vrot.lane.b32.xlu0 %v7240_v16, %s7128_s30 }
 0x299   :  { %1525 = vrot.lane.b32.xlu0 %v7240_v16, %s7129_s7 }
 0x29c   :  { %842 = vmax.xlane.f32.xlu1 %v841_v60 }
 0x29d   :  { %1683 = vrot.lane.b32.xlu0 %v7245_v18, %s7128_s30 }
 0x2ad   :  { %1069 = vrot.lane.b32.xlu1 %v7245_v18, %s7127_s29 }
 0x2b1   :  { %1145 = vrot.lane.b32.xlu1 %v7243_v17, %s7127_s29 }
 0x2b5   :  { %1297 = vrot.lane.b32.xlu1 %v7249_v19, %s7127_s29 }
 0x2b9   :  { %1449 = vrot.lane.b32.xlu1 %v7255_v21, %s7127_s29 }
 0x2bd   :  { %1605 = vrot.lane.b32.xlu1 %v7237_v15, %s7128_s30 }
 0x2c1   :  { %1603 = vrot.lane.b32.xlu1 %v7237_v15, %s7129_s7 }
 0x2e5   :  { %848 = vmax.xlane.f32.xlu1 %v847_v62 }
 0x2f0   :  { %v831_v63 = vpop.xlane.xlu0 %830 }
 0x2f1   :  { %v853_v24 = vsub.f32 %v7309_v32, %v831_v63 }
 0x2f3   :  { %v861_v28 = vmul.f32 1.442695, %v853_v24 }
 0x2f4   :  { %v837_v0 = vpop.xlane.xlu0 %836  ;;  %v834_v1 = vpop.xlane.xlu1 %833 }
 0x2f5   :  { %v854_v2 = vsub.f32 %v822_v38, %v834_v1  ;;  %v855_v29 = vsub.f32 %v7313_v37, %v837_v0 }
 0x2f6   :  { %1761 = vrot.lane.b32.xlu1 %v7243_v17, %s7128_s30 }
 0x2f7   :  { %v863_v3 = vmul.f32 1.442695, %v854_v2  ;;  %v865_v32 = vmul.f32 1.442695, %v855_v29 }
 0x2f8   :  { %v840_v4 = vpop.xlane.xlu0 %839  ;;  %v918_v5 = vpop.permute.xlu1 %917 }
 0x2f9   :  { %v856_v6 = vsub.f32 %v824_v45, %v840_v4  ;;  %6524 = vmatpush3.msra.mxu1 %v918_v5  ;;  %6863 = vpow2.f32 %v863_v3 }
 0x2fa   :  { %6533 = vmatprep.subr.mxu1 %v7124_v14 }
 0x2fb   :  { %v867_v7 = vmul.f32 1.442695, %v856_v6 }
 0x2fc   :  { %v846_v8 = vpop.xlane.xlu0 %845 }
 0x2fd   :  { %6865 = vpow2.f32 %v867_v7  ;;  %v858_v9 = vsub.f32 %v826_v48, %v846_v8 }
 0x2ff   :  { %v871_v10 = vmul.f32 1.442695, %v858_v9 }
 0x300   :  { %v852_v11 = vpop.xlane.xlu0 %851 }
 0x301   :  { %6867 = vpow2.f32 %v871_v10  ;;  %v860_v12 = vsub.f32 %v828_v55, %v852_v11 }
 0x303   :  { %v875_v13 = vmul.f32 1.442695, %v860_v12  ;;  %v7350_v23 = vpop.eup %6863 }
 0x304   :  { %v994_v25 = vpop.permute.xlu0 %993  ;;  %v880_v26 = vsel %vm207_vm2, %v7350_v23, 0.0 }
 0x305   :  { %6869 = vpow2.f32 %v875_v13  ;;  %6529 = vmatpush3.msra.mxu0 %v994_v25  ;;  %881 = vadd.xlane.f32.xlu0 %v880_v26 }
 0x306   :  { %6538 = vmatprep.subr.mxu0 %v7124_v14  ;;  %6871 = vpow2.f32 %v861_v28 }
 0x307   :  { %v7356_v27 = vpop.eup %6865  ;;  %6873 = vpow2.f32 %v865_v32 }
 0x308   :  { %v886_v30 = vsel %vm207_vm2, %v7356_v27, 0.0  ;;  %v7397_v54 = vpop.permute.xlu0 %1221 }
 0x309   :  { %887 = vadd.xlane.f32.xlu0 %v886_v30 }
 0x30b   :  { %v7361_v31 = vpop.eup %6867 }
 0x30c   :  { %v892_v33 = vsel %vm207_vm2, %v7361_v31, 0.0  ;;  %v7399_v55 = vpop.permute.xlu0 %1373 }
 0x30d   :  { %893 = vadd.xlane.f32.xlu0 %v892_v33 }
 0x30f   :  { %v7365_v34 = vpop.eup %6869 }
 0x310   :  { %v898_v35 = vsel %vm207_vm2, %v7365_v34, 0.0  ;;  %v7369_v36 = vpop.eup %6871  ;;  %v7405_v58 = vpop.permute.xlu0 %1527 }
 0x311   :  { %899 = vadd.xlane.f32.xlu0 %v898_v35  ;;  %v877_v37 = vsel %vm207_vm2, %v7369_v36, 0.0  ;;  %v7373_v38 = vpop.eup %6873 }
 0x312   :  { %v883_v39 = vsel %vm207_vm2, %v7373_v38, 0.0 }
 0x31a   :  { %878 = vadd.xlane.f32.xlu1 %v877_v37 }
 0x31e   :  { %884 = vadd.xlane.f32.xlu1 %v883_v39 }
 0x327   :  { %1681 = vrot.lane.b32.xlu0 %v7245_v18, %s7129_s7 }
 0x329   :  { %v843_v40 = vpop.xlane.xlu1 %842 }
 0x32a   :  { %v857_v41 = vsub.f32 %v7327_v59, %v843_v40  ;;  %v7407_v59 = vpop.permute.xlu0 %1525 }
 0x32b   :  { %1839 = vrot.lane.b32.xlu0 %v7252_v20, %s7128_s30 }
 0x32c   :  { %v869_v42 = vmul.f32 1.442695, %v857_v41 }
 0x32d   :  { %v7394_v45 = vpop.permute.xlu1 %1069 }
 0x32e   :  { %6875 = vpow2.f32 %v869_v42  ;;  %v7409_v60 = vpop.permute.xlu0 %1683 }
 0x32f   :  { %1837 = vrot.lane.b32.xlu0 %v7252_v20, %s7129_s7 }
 0x331   :  { %v1146_v46 = vpop.permute.xlu1 %1145 }
 0x333   :  { %1995 = vrot.lane.b32.xlu0 %v7258_v22, %s7128_s30 }
 0x335   :  { %v1298_v47 = vpop.permute.xlu1 %1297 }
 0x337   :  { %1993 = vrot.lane.b32.xlu0 %v7258_v22, %s7129_s7 }
 0x338   :  { %v7386_v43 = vpop.eup %6875 }
 0x339   :  { %v889_v44 = vsel %vm207_vm2, %v7386_v43, 0.0  ;;  %v1450_v48 = vpop.permute.xlu1 %1449 }
 0x33a   :  { %890 = vadd.xlane.f32.xlu1 %v889_v44 }
 0x33d   :  { %v1606_v49 = vpop.permute.xlu1 %1605 }
 0x341   :  { %v1604_v50 = vpop.permute.xlu1 %1603 }
 0x34b   :  { %1759 = vrot.lane.b32.xlu1 %v7243_v17, %s7129_s7 }
 0x372   :  { %v849_v51 = vpop.xlane.xlu1 %848 }
 0x373   :  { %v859_v52 = vsub.f32 %v7343_v61, %v849_v51 }
 0x375   :  { %v873_v53 = vmul.f32 1.442695, %v859_v52 }
 0x376   :  { %v1762_v4 = vpop.permute.xlu1 %1761 }
 0x377   :  { %6877 = vpow2.f32 %v873_v53 }
 0x381   :  { %v7401_v56 = vpop.eup %6877 }
 0x382   :  { %v895_v57 = vsel %vm207_vm2, %v7401_v56, 0.0 }
 0x383   :  { %896 = vadd.xlane.f32.xlu1 %v895_v57 }
 0x392   :  { %v882_v62 = vpop.xlane.xlu0 %881 }
 0x393   :  { %6879 = vrcp.f32 %v882_v62 }
 0x394   :  { %1917 = vrot.lane.b32.xlu1 %v7249_v19, %s7128_s30 }
 0x396   :  { %v888_v61 = vpop.xlane.xlu0 %887 }
 0x397   :  { %6881 = vrcp.f32 %v888_v61 }
 0x398   :  { %1915 = vrot.lane.b32.xlu1 %v7249_v19, %s7129_s7 }
 0x39a   :  { %v894_v63 = vpop.xlane.xlu0 %893 }
 0x39b   :  { %6883 = vrcp.f32 %v894_v63 }
 0x39c   :  { %2073 = vrot.lane.b32.xlu1 %v7255_v21, %s7128_s30 }
 0x39d   :  { %v6880_v0 = vpop.eup %6879 }
 0x39e   :  { %v900_v1 = vpop.xlane.xlu0 %899  ;;  %v910_v2 = vmul.f32 %v6880_v0, %v7350_v23 }
 0x39f   :  { %6885 = vrcp.f32 %v900_v1 }
 0x3a0   :  { %2071 = vrot.lane.b32.xlu1 %v7255_v21, %s7129_s7  ;;  %6531 = vmatmul.mubr.msk.f32.vlgmr.msra.gmra.mrb[16].mxu0 %vm207_vm2, %v910_v2 }
 0x3a1   :  { %v6882_v3 = vpop.eup %6881  ;;  %6539 = vmatpush3.msra.mxu0 %v1146_v46  ;;  %6540 = vmatprep.mubr.msk.f32.mxu0 %vm7125_vm1, %v7124_v14 }
 0x3a2   :  { %6548 = vmatprep.subr.mxu0 %v7124_v14  ;;  %v912_v5 = vmul.f32 %v6882_v3, %v7356_v27 }
 0x3a4   :  { %6541 = vmatmul.mubr.msk.f32.vlgmr.msra.gmra.mrb[18].mxu0 %vm207_vm2, %v912_v5 }
 0x3a5   :  { %v6884_v6 = vpop.eup %6883  ;;  %6549 = vmatpush3.msra.mxu0 %v1298_v47  ;;  %6550 = vmatprep.mubr.msk.f32.mxu0 %vm7125_vm1, %v7124_v14 }
 0x3a6   :  { %6558 = vmatprep.subr.mxu0 %v7124_v14  ;;  %v914_v8 = vmul.f32 %v6884_v6, %v7361_v31  ;;  %v1682_v31 = vpop.permute.xlu0 %1681 }
 0x3a7   :  { %v879_v7 = vpop.xlane.xlu1 %878 }
 0x3a8   :  { %6887 = vrcp.f32 %v879_v7  ;;  %6551 = vmatmul.mubr.msk.f32.vlgmr.msra.gmra.mrb[20].mxu0 %vm207_vm2, %v914_v8 }
 0x3a9   :  { %v6886_v9 = vpop.eup %6885  ;;  %6559 = vmatpush3.msra.mxu0 %v1450_v48  ;;  %6560 = vmatprep.mubr.msk.f32.mxu0 %vm7125_vm1, %v7124_v14 }
 0x3aa   :  { %v916_v11 = vmul.f32 %v6886_v9, %v7365_v34  ;;  %6568 = vmatprep.subr.mxu0 %v7124_v14  ;;  %v1840_v34 = vpop.permute.xlu0 %1839 }
 0x3ab   :  { %v885_v10 = vpop.xlane.xlu1 %884 }
 0x3ac   :  { %6889 = vrcp.f32 %v885_v10  ;;  %6561 = vmatmul.mubr.msk.f32.vlgmr.msra.gmra.mrb[22].mxu0 %vm207_vm2, %v916_v11 }
 0x3ad   :  { %6570 = vmatprep.mubr.msk.f32.mxu0 %vm7125_vm1, %v7124_v14 }
 0x3b0   :  { %6569 = vmatpush3.xpose.msk.msra.mxu0 %vm207_vm2, %v1606_v49 }
 0x3b1   :  { %6578 = vmatprep.subr.mxu0 %v7124_v14 }
 0x3b2   :  { %v6888_v12 = vpop.eup %6887 }
 0x3b3   :  { %v909_v13 = vmul.f32 %v6888_v12, %v7369_v36  ;;  %6571 = vmatmul.mubr.msk.f32.vlgmr.msra.gmra.mrb[24].mxu0 %vm207_vm2, %v1604_v50 }
 0x3b4   :  { %6579 = vmatpush3.xpose.msk.msra.mxu0 %vm207_vm2, %v1762_v4  ;;  %6580 = vmatprep.mubr.msk.f32.mxu0 %vm7125_vm1, %v7124_v14 }
 0x3b5   :  { %6526 = vmatmul.mubr.msk.f32.vlgmr.msra.gmra.mrb[8].mxu1 %vm207_vm2, %v909_v13  ;;  %6588 = vmatprep.subr.mxu0 %v7124_v14 }
 0x3b6   :  { %v6890_v23 = vpop.eup %6889  ;;  %6534 = vmatpush3.msra.mxu1 %v7394_v45  ;;  %6535 = vmatprep.mubr.msk.f32.mxu1 %vm7125_vm1, %v7124_v14 }
 0x3b7   :  { %6543 = vmatprep.subr.mxu1 %v7124_v14  ;;  %v911_v24 = vmul.f32 %v6890_v23, %v7373_v38  ;;  %v1838_v38 = vpop.permute.xlu0 %1837 }
 0x3b9   :  { %6536 = vmatmul.mubr.msk.f32.vlgmr.msra.gmra.mrb[10].mxu1 %vm207_vm2, %v911_v24 }
 0x3ba   :  { %6544 = vmatpush3.msra.mxu1 %v7397_v54  ;;  %6545 = vmatprep.mubr.msk.f32.mxu1 %vm7125_vm1, %v7124_v14 }
 0x3bb   :  { %6553 = vmatprep.subr.mxu1 %v7124_v14  ;;  %v1996_v39 = vpop.permute.xlu0 %1995 }
 0x3bf   :  { %v1994_v40 = vpop.permute.xlu0 %1993 }
 0x3c7   :  { %v891_v25 = vpop.xlane.xlu1 %890 }
 0x3c8   :  { %6891 = vrcp.f32 %v891_v25 }
 0x3cb   :  { %v1760_v26 = vpop.permute.xlu1 %1759 }
 0x3cc   :  { %6581 = vmatmul.mubr.msk.f32.vlgmr.msra.gmra.mrb[26].mxu0 %vm207_vm2, %v1760_v26 }
 0x3cd   :  { %6590 = vmatprep.mubr.msk.f32.mxu0 %vm7125_vm1, %v7124_v14 }
 0x3d2   :  { %v6892_v27 = vpop.eup %6891 }
 0x3d3   :  { %v913_v28 = vmul.f32 %v6892_v27, %v7386_v43 }
 0x3d5   :  { %6546 = vmatmul.mubr.msk.f32.vlgmr.msra.gmra.mrb[12].mxu1 %vm207_vm2, %v913_v28 }
 0x3d6   :  { %6554 = vmatpush3.msra.mxu1 %v7399_v55  ;;  %6555 = vmatprep.mubr.msk.f32.mxu1 %vm7125_vm1, %v7124_v14 }
 0x3d7   :  { %6563 = vmatprep.subr.mxu1 %v7124_v14 }
 0x410   :  { %v897_v29 = vpop.xlane.xlu1 %896 }
 0x411   :  { %6893 = vrcp.f32 %v897_v29 }
 0x414   :  { %v1918_v30 = vpop.permute.xlu1 %1917 }
 0x415   :  { %6589 = vmatpush3.xpose.msk.msra.mxu0 %vm207_vm2, %v1918_v30 }
 0x416   :  { %6598 = vmatprep.subr.mxu0 %v7124_v14 }
 0x418   :  { %v1916_v32 = vpop.permute.xlu1 %1915 }
 0x419   :  { %6591 = vmatmul.mubr.msk.f32.vlgmr.msra.gmra.mrb[28].mxu0 %vm207_vm2, %v1916_v32 }
 0x41a   :  { %6600 = vmatprep.mubr.msk.f32.mxu0 %vm7125_vm1, %v7124_v14 }
 0x41b   :  { %v6894_v33 = vpop.eup %6893 }
 0x41c   :  { %v2074_v35 = vpop.permute.xlu1 %2073  ;;  %v915_v36 = vmul.f32 %v6894_v33, %v7401_v56 }
 0x41d   :  { %6599 = vmatpush3.xpose.msk.msra.mxu0 %vm207_vm2, %v2074_v35 }
 0x41e   :  { %6556 = vmatmul.mubr.msk.f32.vlgmr.msra.gmra.mrb[14].mxu1 %vm207_vm2, %v915_v36  ;;  %6608 = vmatprep.subr.mxu0 %v7124_v14 }
 0x41f   :  { %6564 = vmatpush3.xpose.msk.msra.mxu1 %vm207_vm2, %v7405_v58  ;;  %6565 = vmatprep.mubr.msk.f32.mxu1 %vm7125_vm1, %v7124_v14 }
 0x420   :  { %v2072_v37 = vpop.permute.xlu1 %2071  ;;  %6573 = vmatprep.subr.mxu1 %v7124_v14 }
 0x421   :  { %6601 = vmatmul.mubr.msk.f32.vlgmr.msra.gmra.mrb[30].mxu0 %vm207_vm2, %v2072_v37 }
 0x422   :  { %6566 = vmatmul.mubr.msk.f32.vlgmr.msra.gmra.mrb[16].mxu1 %vm207_vm2, %v7407_v59  ;;  %6610 = vmatprep.mubr.msk.f32.mxu0 %vm7125_vm1, %v7124_v14 }
 0x423   :  { %6574 = vmatpush3.xpose.msk.msra.mxu1 %vm207_vm2, %v7409_v60  ;;  %6575 = vmatprep.mubr.msk.f32.mxu1 %vm7125_vm1, %v7124_v14 }
 0x424   :  { %6583 = vmatprep.subr.mxu1 %v7124_v14 }
 0x426   :  { %6576 = vmatmul.mubr.msk.f32.vlgmr.msra.gmra.mrb[18].mxu1 %vm207_vm2, %v1682_v31 }
 0x427   :  { %6584 = vmatpush3.xpose.msk.msra.mxu1 %vm207_vm2, %v1840_v34  ;;  %6585 = vmatprep.mubr.msk.f32.mxu1 %vm7125_vm1, %v7124_v14 }
 0x428   :  { %6593 = vmatprep.subr.mxu1 %v7124_v14 }
 0x42a   :  { %6586 = vmatmul.mubr.msk.f32.vlgmr.msra.gmra.mrb[20].mxu1 %vm207_vm2, %v1838_v38 }
 0x42b   :  { %6594 = vmatpush3.xpose.msk.msra.mxu1 %vm207_vm2, %v1996_v39  ;;  %6595 = vmatprep.mubr.msk.f32.mxu1 %vm7125_vm1, %v7124_v14 }
 0x42c   :  { %6603 = vmatprep.subr.mxu1 %v7124_v14 }
 0x42e   :  { %6596 = vmatmul.mubr.msk.f32.vlgmr.msra.gmra.mrb[22].mxu1 %vm207_vm2, %v1994_v40 }
 0x42f   :  { %6605 = vmatprep.mubr.msk.f32.mxu1 %vm7125_vm1, %v7124_v14 }
 0x473   :  { %v7503_v41 = vpop.f32.mrb[16].mxu0 }
 0x474   :  { %v6532_v42 = vpop.f32.mrb[17].mxu0 }
 0x477   :  { %v7505_v43 = vpop.f32.mrb[18].mxu0 }
 0x478   :  { %v6542_v44 = vpop.f32.mrb[19].mxu0 }
 0x47b   :  { %v7507_v45 = vpop.f32.mrb[20].mxu0 }
 0x47c   :  { %v6552_v46 = vpop.f32.mrb[21].mxu0 }
 0x47f   :  { %v7509_v47 = vpop.f32.mrb[22].mxu0 }
 0x480   :  { %v6562_v48 = vpop.f32.mrb[23].mxu0 }
 0x486   :  { %v1677_v49 = vpop.f32.mrb[24].mxu0 }
 0x487   :  { %v2150_v50 = vmul.f32 0.35355338, %v1677_v49  ;;  %v6572_v51 = vpop.f32.mrb[25].mxu0 }
 0x488   :  { %v7511_v52 = vpop.f32.mrb[8].mxu1 }
 0x489   :  { %v6527_v53 = vpop.f32.mrb[9].mxu1  ;;  %v2160_v54 = vsel %vm207_vm2, %v2150_v50, -inf }
 0x48a   :  { %2161 = vmax.xlane.f32.xlu1 %v2160_v54 }
 0x48c   :  { %v7514_v55 = vpop.f32.mrb[10].mxu1 }
 0x48d   :  { %v6537_v56 = vpop.f32.mrb[11].mxu1 }
 0x49f   :  { %v1833_v57 = vpop.f32.mrb[26].mxu0 }
 0x4a0   :  { %v6582_v58 = vpop.f32.mrb[27].mxu0  ;;  %v2152_v10 = vmul.f32 0.35355338, %v1833_v57 }
 0x4a2   :  { %v2166_v26 = vsel %vm207_vm2, %v2152_v10, -inf }
 0x4a8   :  { %v7516_v59 = vpop.f32.mrb[12].mxu1 }
 0x4a9   :  { %v6547_v60 = vpop.f32.mrb[13].mxu1 }
 0x4ec   :  { %v1989_v62 = vpop.f32.mrb[28].mxu0 }
 0x4ed   :  { %v6592_v61 = vpop.f32.mrb[29].mxu0  ;;  %v2154_v24 = vmul.f32 0.35355338, %v1989_v62 }
 0x4ef   :  { %v2172_v30 = vsel %vm207_vm2, %v2154_v24, -inf }
 0x4f1   :  { %v7518_v63 = vpop.f32.mrb[14].mxu1 }
 0x4f2   :  { %v6557_v0 = vpop.f32.mrb[15].mxu1 }
 0x4f4   :  { %v2145_v1 = vpop.f32.mrb[30].mxu0 }
 0x4f5   :  { %v1599_v2 = vpop.f32.mrb[16].mxu1  ;;  %v6602_v3 = vpop.f32.mrb[31].mxu0  ;;  %v2156_v29 = vmul.f32 0.35355338, %v2145_v1 }
 0x4f6   :  { %v2149_v4 = vmul.f32 0.35355338, %v1599_v2  ;;  %v6567_v5 = vpop.f32.mrb[17].mxu1 }
 0x4f7   :  { %v2178_v31 = vsel %vm207_vm2, %v2156_v29, -inf }
 0x4f8   :  { %v2157_v6 = vsel %vm207_vm2, %v2149_v4, -inf }
 0x4f9   :  { %2158 = vmax.xlane.f32.xlu0 %v2157_v6  ;;  %v1755_v7 = vpop.f32.mrb[18].mxu1 }
 0x4fa   :  { %v2151_v8 = vmul.f32 0.35355338, %v1755_v7  ;;  %v6577_v9 = vpop.f32.mrb[19].mxu1 }
 0x4fc   :  { %v2163_v11 = vsel %vm207_vm2, %v2151_v8, -inf }
 0x4fd   :  { %2164 = vmax.xlane.f32.xlu0 %v2163_v11  ;;  %v1911_v12 = vpop.f32.mrb[20].mxu1 }
 0x4fe   :  { %v2153_v13 = vmul.f32 0.35355338, %v1911_v12  ;;  %v6587_v23 = vpop.f32.mrb[21].mxu1 }
 0x500   :  { %v2169_v25 = vsel %vm207_vm2, %v2153_v13, -inf }
 0x501   :  { %v2067_v27 = vpop.f32.mrb[22].mxu1  ;;  %2170 = vmax.xlane.f32.xlu1 %v2169_v25  ;;  %2167 = vmax.xlane.f32.xlu0 %v2166_v26 }
 0x502   :  { %v6597_v28 = vpop.f32.mrb[23].mxu1  ;;  %v7534_v32 = vmul.f32 0.35355338, %v2067_v27 }
 0x504   :  { %v2175_v33 = vsel %vm207_vm2, %v7534_v32, -inf }
 0x505   :  { %2173 = vmax.xlane.f32.xlu0 %v2172_v30 }
 0x509   :  { %2179 = vmax.xlane.f32.xlu0 %v2178_v31 }
 0x512   :  { %2245 = vrot.lane.b32.xlu1 %v7240_v16, %s7130_s8 }
 0x517   :  { %v2162_v34 = vpop.xlane.xlu1 %2161 }
 0x518   :  { %v2182_v35 = vsub.f32 %v2150_v50, %v2162_v34 }
 0x51a   :  { %v2191_v36 = vmul.f32 1.442695, %v2182_v35 }
 0x51c   :  { %6895 = vpow2.f32 %v2191_v36 }
 0x51f   :  { %2321 = vrot.lane.b32.xlu0 %v7237_v15, %s7130_s8 }
 0x523   :  { %2549 = vrot.lane.b32.xlu0 %v7252_v20, %s7130_s8 }
 0x526   :  { %v7542_v37 = vpop.eup %6895 }
 0x527   :  { %2701 = vrot.lane.b32.xlu0 %v7258_v22, %s7130_s8  ;;  %v2208_v38 = vsel %vm207_vm2, %v7542_v37, 0.0 }
 0x52b   :  { %2855 = vrot.lane.b32.xlu0 %v7240_v16, %s7131_s9 }
 0x52f   :  { %2853 = vrot.lane.b32.xlu0 %v7240_v16, %s7132_s10 }
 0x533   :  { %3011 = vrot.lane.b32.xlu0 %v7245_v18, %s7131_s9 }
 0x536   :  { %2176 = vmax.xlane.f32.xlu1 %v2175_v33 }
 0x547   :  { %2397 = vrot.lane.b32.xlu1 %v7245_v18, %s7130_s8 }
 0x54b   :  { %2473 = vrot.lane.b32.xlu1 %v7243_v17, %s7130_s8 }
 0x54f   :  { %2625 = vrot.lane.b32.xlu1 %v7249_v19, %s7130_s8 }
 0x552   :  { %2209 = vadd.xlane.f32.xlu0 %v2208_v38 }
 0x553   :  { %2777 = vrot.lane.b32.xlu1 %v7255_v21, %s7130_s8 }
 0x557   :  { %2933 = vrot.lane.b32.xlu1 %v7237_v15, %s7131_s9 }
 0x55b   :  { %2931 = vrot.lane.b32.xlu1 %v7237_v15, %s7132_s10 }
 0x55f   :  { %3089 = vrot.lane.b32.xlu1 %v7243_v17, %s7131_s9 }
 0x586   :  { %v2159_v39 = vpop.xlane.xlu0 %2158 }
 0x587   :  { %v2181_v40 = vsub.f32 %v2149_v4, %v2159_v39 }
 0x589   :  { %v2189_v42 = vmul.f32 1.442695, %v2181_v40 }
 0x58a   :  { %v2165_v44 = vpop.xlane.xlu0 %2164 }
 0x58b   :  { %6897 = vpow2.f32 %v2189_v42  ;;  %v2183_v46 = vsub.f32 %v2151_v8, %v2165_v44 }
 0x58d   :  { %v2193_v48 = vmul.f32 1.442695, %v2183_v46 }
 0x58e   :  { %v2171_v49 = vpop.xlane.xlu1 %2170  ;;  %v2168_v50 = vpop.xlane.xlu0 %2167 }
 0x58f   :  { %6899 = vpow2.f32 %v2193_v48  ;;  %v2185_v51 = vsub.f32 %v2153_v13, %v2171_v49  ;;  %v2184_v53 = vsub.f32 %v2152_v10, %v2168_v50 }
 0x591   :  { %v2197_v54 = vmul.f32 1.442695, %v2185_v51  ;;  %v2195_v56 = vmul.f32 1.442695, %v2184_v53 }
 0x592   :  { %v2246_v57 = vpop.permute.xlu1 %2245  ;;  %v2174_v58 = vpop.xlane.xlu0 %2173 }
 0x593   :  { %6901 = vpow2.f32 %v2197_v54  ;;  %v2186_v60 = vsub.f32 %v2154_v24, %v2174_v58  ;;  %6604 = vmatpush3.msra.mxu1 %v2246_v57 }
 0x594   :  { %6903 = vpow2.f32 %v2195_v56  ;;  %6613 = vmatprep.subr.mxu1 %v7124_v14 }
 0x595   :  { %v7555_v62 = vpop.eup %6897  ;;  %v2199_v61 = vmul.f32 1.442695, %v2186_v60 }
 0x596   :  { %v2180_v0 = vpop.xlane.xlu0 %2179  ;;  %v2205_v1 = vsel %vm207_vm2, %v7555_v62, 0.0 }
 0x597   :  { %6905 = vpow2.f32 %v2199_v61  ;;  %v2188_v2 = vsub.f32 %v2156_v29, %v2180_v0  ;;  %2206 = vadd.xlane.f32.xlu1 %v2205_v1 }
 0x599   :  { %v7559_v3 = vpop.eup %6899  ;;  %v2203_v4 = vmul.f32 1.442695, %v2188_v2 }
 0x59a   :  { %v2322_v5 = vpop.permute.xlu0 %2321  ;;  %v2211_v6 = vsel %vm207_vm2, %v7559_v3, 0.0 }
 0x59b   :  { %6907 = vpow2.f32 %v2203_v4  ;;  %2212 = vadd.xlane.f32.xlu1 %v2211_v6  ;;  %6609 = vmatpush3.msra.mxu0 %v2322_v5 }
 0x59c   :  { %6618 = vmatprep.subr.mxu0 %v7124_v14 }
 0x59d   :  { %v7564_v7 = vpop.eup %6901 }
 0x59e   :  { %v7566_v8 = vpop.eup %6903  ;;  %v2217_v9 = vsel %vm207_vm2, %v7564_v7, 0.0  ;;  %v7584_v24 = vpop.permute.xlu0 %2549 }
 0x59f   :  { %2218 = vadd.xlane.f32.xlu1 %v2217_v9  ;;  %v2214_v10 = vsel %vm207_vm2, %v7566_v8, 0.0 }
 0x5a0   :  { %2215 = vadd.xlane.f32.xlu0 %v2214_v10 }
 0x5a1   :  { %v7572_v11 = vpop.eup %6905 }
 0x5a2   :  { %v2220_v12 = vsel %vm207_vm2, %v7572_v11, 0.0  ;;  %v7589_v28 = vpop.permute.xlu0 %2701 }
 0x5a4   :  { %2221 = vadd.xlane.f32.xlu0 %v2220_v12 }
 0x5a5   :  { %v7576_v13 = vpop.eup %6907 }
 0x5a6   :  { %v2226_v23 = vsel %vm207_vm2, %v7576_v13, 0.0  ;;  %v7595_v29 = vpop.permute.xlu0 %2855 }
 0x5a8   :  { %2227 = vadd.xlane.f32.xlu0 %v2226_v23 }
 0x5be   :  { %3009 = vrot.lane.b32.xlu0 %v7245_v18, %s7132_s10 }
 0x5c2   :  { %3167 = vrot.lane.b32.xlu0 %v7252_v20, %s7131_s9 }
 0x5c3   :  { %v2177_v25 = vpop.xlane.xlu1 %2176 }
 0x5c4   :  { %v2187_v26 = vsub.f32 %v7534_v32, %v2177_v25  ;;  %v7603_v32 = vpop.permute.xlu0 %2853 }
 0x5c6   :  { %v2201_v27 = vmul.f32 1.442695, %v2187_v26  ;;  %3165 = vrot.lane.b32.xlu0 %v7252_v20, %s7132_s10 }
 0x5c7   :  { %v2398_v35 = vpop.permute.xlu1 %2397 }
 0x5c8   :  { %6909 = vpow2.f32 %v2201_v27  ;;  %v7609_v33 = vpop.permute.xlu0 %3011 }
 0x5ca   :  { %3323 = vrot.lane.b32.xlu0 %v7258_v22, %s7131_s9 }
 0x5cb   :  { %v2474_v39 = vpop.permute.xlu1 %2473 }
 0x5ce   :  { %3321 = vrot.lane.b32.xlu0 %v7258_v22, %s7132_s10 }
 0x5d2   :  { %v7597_v30 = vpop.eup %6909  ;;  %3649 = vrot.lane.b32.xlu0 %v7237_v15, %s7133_s11 }
 0x5d3   :  { %v2223_v31 = vsel %vm207_vm2, %v7597_v30, 0.0 }
 0x5d4   :  { %2224 = vadd.xlane.f32.xlu1 %v2223_v31 }
 0x5d6   :  { %3877 = vrot.lane.b32.xlu0 %v7252_v20, %s7133_s11 }
 0x5da   :  { %4029 = vrot.lane.b32.xlu0 %v7258_v22, %s7133_s11 }
 0x5de   :  { %4183 = vrot.lane.b32.xlu0 %v7240_v16, %s7134_s12 }
 0x5df   :  { %v2210_v34 = vpop.xlane.xlu0 %2209 }
 0x5e0   :  { %6911 = vrcp.f32 %v2210_v34 }
 0x5e2   :  { %4181 = vrot.lane.b32.xlu0 %v7240_v16, %s7135_s13 }
 0x5e5   :  { %3087 = vrot.lane.b32.xlu1 %v7243_v17, %s7132_s10 }
 0x5e9   :  { %3245 = vrot.lane.b32.xlu1 %v7249_v19, %s7131_s9 }
 0x5ea   :  { %v6912_v36 = vpop.eup %6911 }
 0x5eb   :  { %v2238_v38 = vmul.f32 %v6912_v36, %v7542_v37  ;;  %v2626_v37 = vpop.permute.xlu1 %2625 }
 0x5ed   :  { %3243 = vrot.lane.b32.xlu1 %v7249_v19, %s7132_s10  ;;  %6611 = vmatmul.mubr.msk.f32.vlgmr.msra.gmra.mrb[32].mxu0 %vm207_vm2, %v2238_v38 }
 0x5ee   :  { %6619 = vmatpush3.msra.mxu0 %v2474_v39  ;;  %6620 = vmatprep.mubr.msk.f32.mxu0 %vm7125_vm1, %v7124_v14 }
 0x5ef   :  { %6628 = vmatprep.subr.mxu0 %v7124_v14  ;;  %v2778_v40 = vpop.permute.xlu1 %2777 }
 0x5f1   :  { %3401 = vrot.lane.b32.xlu1 %v7255_v21, %s7131_s9 }
 0x5f3   :  { %v2934_v42 = vpop.permute.xlu1 %2933 }
 0x5f5   :  { %3399 = vrot.lane.b32.xlu1 %v7255_v21, %s7132_s10 }
 0x5f7   :  { %v2932_v44 = vpop.permute.xlu1 %2931 }
 0x5f9   :  { %3573 = vrot.lane.b32.xlu1 %v7240_v16, %s7133_s11 }
 0x5fb   :  { %v3090_v46 = vpop.permute.xlu1 %3089 }
 0x5fd   :  { %3725 = vrot.lane.b32.xlu1 %v7245_v18, %s7133_s11 }
 0x601   :  { %3801 = vrot.lane.b32.xlu1 %v7243_v17, %s7133_s11 }
 0x605   :  { %3953 = vrot.lane.b32.xlu1 %v7249_v19, %s7133_s11 }
 0x609   :  { %4105 = vrot.lane.b32.xlu1 %v7255_v21, %s7133_s11 }
 0x60d   :  { %4261 = vrot.lane.b32.xlu1 %v7237_v15, %s7134_s12 }
 0x611   :  { %4259 = vrot.lane.b32.xlu1 %v7237_v15, %s7135_s13 }
 0x624   :  { %v2207_v48 = vpop.xlane.xlu1 %2206 }
 0x625   :  { %6913 = vrcp.f32 %v2207_v48 }
 0x628   :  { %v2213_v49 = vpop.xlane.xlu1 %2212 }
 0x629   :  { %6915 = vrcp.f32 %v2213_v49 }
 0x62c   :  { %v2219_v50 = vpop.xlane.xlu1 %2218 }
 0x62d   :  { %6917 = vrcp.f32 %v2219_v50  ;;  %v2216_v51 = vpop.xlane.xlu0 %2215 }
 0x62e   :  { %6919 = vrcp.f32 %v2216_v51 }
 0x62f   :  { %v6914_v53 = vpop.eup %6913 }
 0x630   :  { %v2237_v54 = vmul.f32 %v6914_v53, %v7555_v62 }
 0x631   :  { %v2222_v56 = vpop.xlane.xlu0 %2221 }
 0x632   :  { %6921 = vrcp.f32 %v2222_v56  ;;  %6606 = vmatmul.mubr.msk.f32.vlgmr.msra.gmra.mrb[24].mxu1 %vm207_vm2, %v2237_v54 }
 0x633   :  { %v6916_v57 = vpop.eup %6915  ;;  %6614 = vmatpush3.msra.mxu1 %v2398_v35  ;;  %6615 = vmatprep.mubr.msk.f32.mxu1 %vm7125_vm1, %v7124_v14 }
 0x634   :  { %6623 = vmatprep.subr.mxu1 %v7124_v14  ;;  %v2239_v58 = vmul.f32 %v6916_v57, %v7559_v3 }
 0x635   :  { %v2228_v60 = vpop.xlane.xlu0 %2227 }
 0x636   :  { %6923 = vrcp.f32 %v2228_v60  ;;  %6616 = vmatmul.mubr.msk.f32.vlgmr.msra.gmra.mrb[26].mxu1 %vm207_vm2, %v2239_v58 }
 0x637   :  { %v6918_v61 = vpop.eup %6917  ;;  %6624 = vmatpush3.msra.mxu1 %v7584_v24  ;;  %6625 = vmatprep.mubr.msk.f32.mxu1 %vm7125_vm1, %v7124_v14 }
 0x638   :  { %v6920_v62 = vpop.eup %6919  ;;  %6633 = vmatprep.subr.mxu1 %v7124_v14  ;;  %v2241_v0 = vmul.f32 %v6918_v61, %v7564_v7 }
 0x639   :  { %v2240_v1 = vmul.f32 %v6920_v62, %v7566_v8  ;;  %v3010_v6 = vpop.permute.xlu0 %3009 }
 0x63a   :  { %6626 = vmatmul.mubr.msk.f32.vlgmr.msra.gmra.mrb[28].mxu1 %vm207_vm2, %v2241_v0 }
 0x63b   :  { %6621 = vmatmul.mubr.msk.f32.vlgmr.msra.gmra.mrb[34].mxu0 %vm207_vm2, %v2240_v1  ;;  %6634 = vmatpush3.msra.mxu1 %v7589_v28 }
 0x63c   :  { %v6922_v2 = vpop.eup %6921  ;;  %6629 = vmatpush3.msra.mxu0 %v2626_v37  ;;  %6630 = vmatprep.mubr.msk.f32.mxu0 %vm7125_vm1, %v7124_v14 }
 0x63d   :  { %6638 = vmatprep.subr.mxu0 %v7124_v14  ;;  %v2242_v3 = vmul.f32 %v6922_v2, %v7572_v11  ;;  %6635 = vmatprep.mubr.msk.f32.mxu1 %vm7125_vm1, %v7124_v14  ;;  %v3168_v7 = vpop.permute.xlu0 %3167 }
 0x63e   :  { %6643 = vmatprep.subr.mxu1 %v7124_v14 }
 0x63f   :  { %6631 = vmatmul.mubr.msk.f32.vlgmr.msra.gmra.mrb[36].mxu0 %vm207_vm2, %v2242_v3 }
 0x640   :  { %v6924_v4 = vpop.eup %6923  ;;  %6639 = vmatpush3.msra.mxu0 %v2778_v40  ;;  %6640 = vmatprep.mubr.msk.f32.mxu0 %vm7125_vm1, %v7124_v14 }
 0x641   :  { %v2244_v5 = vmul.f32 %v6924_v4, %v7576_v13  ;;  %6648 = vmatprep.subr.mxu0 %v7124_v14  ;;  %v3166_v9 = vpop.permute.xlu0 %3165 }
 0x643   :  { %6641 = vmatmul.mubr.msk.f32.vlgmr.msra.gmra.mrb[38].mxu0 %vm207_vm2, %v2244_v5 }
 0x644   :  { %6650 = vmatprep.mubr.msk.f32.mxu0 %vm7125_vm1, %v7124_v14 }
 0x645   :  { %v3324_v12 = vpop.permute.xlu0 %3323 }
 0x647   :  { %6649 = vmatpush3.xpose.msk.msra.mxu0 %vm207_vm2, %v2934_v42 }
 0x648   :  { %6658 = vmatprep.subr.mxu0 %v7124_v14 }
 0x649   :  { %v3322_v25 = vpop.permute.xlu0 %3321 }
 0x64a   :  { %6651 = vmatmul.mubr.msk.f32.vlgmr.msra.gmra.mrb[40].mxu0 %vm207_vm2, %v2932_v44 }
 0x64b   :  { %6659 = vmatpush3.xpose.msk.msra.mxu0 %vm207_vm2, %v3090_v46  ;;  %6660 = vmatprep.mubr.msk.f32.mxu0 %vm7125_vm1, %v7124_v14 }
 0x64c   :  { %6668 = vmatprep.subr.mxu0 %v7124_v14 }
 0x64d   :  { %v3650_v28 = vpop.permute.xlu0 %3649 }
 0x661   :  { %v2225_v8 = vpop.xlane.xlu1 %2224 }
 0x662   :  { %6925 = vrcp.f32 %v2225_v8 }
 0x665   :  { %v3088_v10 = vpop.permute.xlu1 %3087 }
 0x666   :  { %6661 = vmatmul.mubr.msk.f32.vlgmr.msra.gmra.mrb[42].mxu0 %vm207_vm2, %v3088_v10 }
 0x667   :  { %6670 = vmatprep.mubr.msk.f32.mxu0 %vm7125_vm1, %v7124_v14 }
 0x669   :  { %v3246_v11 = vpop.permute.xlu1 %3245 }
 0x66a   :  { %6669 = vmatpush3.xpose.msk.msra.mxu0 %vm207_vm2, %v3246_v11 }
 0x66b   :  { %6678 = vmatprep.subr.mxu0 %v7124_v14 }
 0x66c   :  { %v6926_v13 = vpop.eup %6925 }
 0x66d   :  { %v3244_v23 = vpop.permute.xlu1 %3243  ;;  %v2243_v24 = vmul.f32 %v6926_v13, %v7597_v30 }
 0x66e   :  { %6671 = vmatmul.mubr.msk.f32.vlgmr.msra.gmra.mrb[44].mxu0 %vm207_vm2, %v3244_v23 }
 0x66f   :  { %6636 = vmatmul.mubr.msk.f32.vlgmr.msra.gmra.mrb[30].mxu1 %vm207_vm2, %v2243_v24  ;;  %6680 = vmatprep.mubr.msk.f32.mxu0 %vm7125_vm1, %v7124_v14 }
 0x670   :  { %6644 = vmatpush3.xpose.msk.msra.mxu1 %vm207_vm2, %v7595_v29  ;;  %6645 = vmatprep.mubr.msk.f32.mxu1 %vm7125_vm1, %v7124_v14 }
 0x671   :  { %v3402_v26 = vpop.permute.xlu1 %3401  ;;  %6653 = vmatprep.subr.mxu1 %v7124_v14 }
 0x672   :  { %6679 = vmatpush3.xpose.msk.msra.mxu0 %vm207_vm2, %v3402_v26 }
 0x673   :  { %6646 = vmatmul.mubr.msk.f32.vlgmr.msra.gmra.mrb[32].mxu1 %vm207_vm2, %v7603_v32  ;;  %6688 = vmatprep.subr.mxu0 %v7124_v14 }
 0x674   :  { %6654 = vmatpush3.xpose.msk.msra.mxu1 %vm207_vm2, %v7609_v33  ;;  %6655 = vmatprep.mubr.msk.f32.mxu1 %vm7125_vm1, %v7124_v14 }
 0x675   :  { %v3400_v27 = vpop.permute.xlu1 %3399  ;;  %6663 = vmatprep.subr.mxu1 %v7124_v14 }
 0x676   :  { %6681 = vmatmul.mubr.msk.f32.vlgmr.msra.gmra.mrb[46].mxu0 %vm207_vm2, %v3400_v27 }
 0x677   :  { %6689 = vmatpush3.msra.mxu0 %v3650_v28  ;;  %6656 = vmatmul.mubr.msk.f32.vlgmr.msra.gmra.mrb[34].mxu1 %vm207_vm2, %v3010_v6 }
 0x678   :  { %6664 = vmatpush3.xpose.msk.msra.mxu1 %vm207_vm2, %v3168_v7  ;;  %6665 = vmatprep.mubr.msk.f32.mxu1 %vm7125_vm1, %v7124_v14 }
 0x679   :  { %6673 = vmatprep.subr.mxu1 %v7124_v14  ;;  %6690 = vmatprep.mubr.msk.f32.mxu0 %vm7125_vm1, %v7124_v14  ;;  %v3574_v29 = vpop.permute.xlu1 %3573 }
 0x67a   :  { %6698 = vmatprep.subr.mxu0 %v7124_v14 }
 0x67b   :  { %6666 = vmatmul.mubr.msk.f32.vlgmr.msra.gmra.mrb[36].mxu1 %vm207_vm2, %v3166_v9 }
 0x67c   :  { %6674 = vmatpush3.xpose.msk.msra.mxu1 %vm207_vm2, %v3324_v12  ;;  %6675 = vmatprep.mubr.msk.f32.mxu1 %vm7125_vm1, %v7124_v14 }
 0x67d   :  { %6683 = vmatprep.subr.mxu1 %v7124_v14 }
 0x67f   :  { %6676 = vmatmul.mubr.msk.f32.vlgmr.msra.gmra.mrb[38].mxu1 %vm207_vm2, %v3322_v25 }
 0x680   :  { %6684 = vmatpush3.msra.mxu1 %v3574_v29  ;;  %6685 = vmatprep.mubr.msk.f32.mxu1 %vm7125_vm1, %v7124_v14 }
 0x681   :  { %6693 = vmatprep.subr.mxu1 %v7124_v14 }
 0x6c0   :  { %v7724_v30 = vpop.f32.mrb[32].mxu0 }
 0x6c1   :  { %v6612_v31 = vpop.f32.mrb[33].mxu0 }
 0x705   :  { %v7726_v32 = vpop.f32.mrb[24].mxu1 }
 0x706   :  { %v6607_v33 = vpop.f32.mrb[25].mxu1 }
 0x707   :  { %v7758_v33 = vpop.permute.xlu1 %3725 }
 0x709   :  { %v7728_v34 = vpop.f32.mrb[26].mxu1 }
 0x70a   :  { %v6617_v35 = vpop.f32.mrb[27].mxu1 }
 0x70b   :  { %v7760_v35 = vpop.permute.xlu1 %3801 }
 0x70d   :  { %v7730_v36 = vpop.f32.mrb[28].mxu1 }
 0x70e   :  { %v7732_v38 = vpop.f32.mrb[34].mxu0  ;;  %v6627_v39 = vpop.f32.mrb[29].mxu1 }
 0x70f   :  { %v6622_v37 = vpop.f32.mrb[35].mxu0  ;;  %v7762_v39 = vpop.permute.xlu1 %3953 }
 0x712   :  { %v7734_v40 = vpop.f32.mrb[36].mxu0 }
 0x713   :  { %v6632_v42 = vpop.f32.mrb[37].mxu0  ;;  %v7764_v37 = vpop.permute.xlu1 %4105 }
 0x716   :  { %v7736_v44 = vpop.f32.mrb[38].mxu0 }
 0x717   :  { %v6642_v46 = vpop.f32.mrb[39].mxu0  ;;  %v7766_v42 = vpop.permute.xlu1 %4261 }
 0x71b   :  { %v7768_v46 = vpop.permute.xlu1 %4259 }
 0x71d   :  { %v3005_v48 = vpop.f32.mrb[40].mxu0 }
 0x71e   :  { %v3478_v49 = vmul.f32 0.35355338, %v3005_v48  ;;  %v6652_v50 = vpop.f32.mrb[41].mxu0 }
 0x720   :  { %v3488_v51 = vsel %vm207_vm2, %v3478_v49, -inf }
 0x721   :  { %3489 = vmax.xlane.f32.xlu1 %v3488_v51 }
 0x739   :  { %v3161_v53 = vpop.f32.mrb[42].mxu0 }
 0x73a   :  { %v6662_v54 = vpop.f32.mrb[43].mxu0  ;;  %v3480_v7 = vmul.f32 0.35355338, %v3161_v53 }
 0x73c   :  { %v3494_v23 = vsel %vm207_vm2, %v3480_v7, -inf }
 0x741   :  { %v3317_v56 = vpop.f32.mrb[44].mxu0 }
 0x742   :  { %v7739_v57 = vpop.f32.mrb[30].mxu1  ;;  %v6672_v58 = vpop.f32.mrb[45].mxu0  ;;  %v3482_v12 = vmul.f32 0.35355338, %v3317_v56 }
 0x743   :  { %v6637_v60 = vpop.f32.mrb[31].mxu1  ;;  %v7774_v56 = vpop.permute.xlu0 %3877 }
 0x744   :  { %v3500_v29 = vsel %vm207_vm2, %v3482_v12, -inf }
 0x746   :  { %v2927_v61 = vpop.f32.mrb[32].mxu1 }
 0x747   :  { %v3477_v62 = vmul.f32 0.35355338, %v2927_v61  ;;  %v6647_v0 = vpop.f32.mrb[33].mxu1  ;;  %v7776_v58 = vpop.permute.xlu0 %4029 }
 0x749   :  { %v3473_v1 = vpop.f32.mrb[46].mxu0  ;;  %v3485_v2 = vsel %vm207_vm2, %v3477_v62, -inf }
 0x74a   :  { %3486 = vmax.xlane.f32.xlu0 %v3485_v2  ;;  %v3083_v3 = vpop.f32.mrb[34].mxu1  ;;  %v6682_v4 = vpop.f32.mrb[47].mxu0  ;;  %v7747_v27 = vmul.f32 0.35355338, %v3473_v1 }
 0x74b   :  { %v3479_v5 = vmul.f32 0.35355338, %v3083_v3  ;;  %v6657_v6 = vpop.f32.mrb[35].mxu1  ;;  %v7778_v60 = vpop.permute.xlu0 %4183 }
 0x74c   :  { %v3506_v31 = vsel %vm207_vm2, %v7747_v27, -inf }
 0x74d   :  { %v3491_v8 = vsel %vm207_vm2, %v3479_v5, -inf }
 0x74e   :  { %3492 = vmax.xlane.f32.xlu0 %v3491_v8  ;;  %v3239_v9 = vpop.f32.mrb[36].mxu1 }
 0x74f   :  { %v3481_v10 = vmul.f32 0.35355338, %v3239_v9  ;;  %v6667_v11 = vpop.f32.mrb[37].mxu1  ;;  %v7780_v61 = vpop.permute.xlu0 %4181 }
 0x751   :  { %v3497_v13 = vsel %vm207_vm2, %v3481_v10, -inf }
 0x752   :  { %v3395_v24 = vpop.f32.mrb[38].mxu1  ;;  %3498 = vmax.xlane.f32.xlu1 %v3497_v13  ;;  %3495 = vmax.xlane.f32.xlu0 %v3494_v23 }
 0x753   :  { %v7745_v25 = vmul.f32 0.35355338, %v3395_v24  ;;  %v6677_v26 = vpop.f32.mrb[39].mxu1 }
 0x755   :  { %v3503_v28 = vsel %vm207_vm2, %v7745_v25, -inf }
 0x756   :  { %3504 = vmax.xlane.f32.xlu1 %v3503_v28  ;;  %3501 = vmax.xlane.f32.xlu0 %v3500_v29 }
 0x75a   :  { %3507 = vmax.xlane.f32.xlu0 %v3506_v31 }
 0x767   :  { %4417 = vrot.lane.b32.xlu1 %v7243_v17, %s7134_s12 }
 0x770   :  { %4339 = vrot.lane.b32.xlu0 %v7245_v18, %s7134_s12 }
 0x7ae   :  { %v3490_v48 = vpop.xlane.xlu1 %3489 }
 0x7af   :  { %v3510_v50 = vsub.f32 %v3478_v49, %v3490_v48 }
 0x7b1   :  { %v3519_v51 = vmul.f32 1.442695, %v3510_v50 }
 0x7b3   :  { %6927 = vpow2.f32 %v3519_v51 }
 0x7bd   :  { %v7770_v53 = vpop.eup %6927 }
 0x7be   :  { %v3536_v54 = vsel %vm207_vm2, %v7770_v53, 0.0 }
 0x7bf   :  { %3537 = vadd.xlane.f32.xlu0 %v3536_v54 }
 0x7d7   :  { %v3487_v0 = vpop.xlane.xlu0 %3486 }
 0x7d8   :  { %v3509_v1 = vsub.f32 %v3477_v62, %v3487_v0 }
 0x7da   :  { %v3517_v2 = vmul.f32 1.442695, %v3509_v1 }
 0x7db   :  { %v3493_v49 = vpop.xlane.xlu0 %3492 }
 0x7dc   :  { %6929 = vpow2.f32 %v3517_v2  ;;  %v3511_v3 = vsub.f32 %v3479_v5, %v3493_v49 }
 0x7de   :  { %v3521_v4 = vmul.f32 1.442695, %v3511_v3 }
 0x7df   :  { %v3499_v6 = vpop.xlane.xlu1 %3498  ;;  %v3496_v8 = vpop.xlane.xlu0 %3495 }
 0x7e0   :  { %6931 = vpow2.f32 %v3521_v4  ;;  %v3513_v9 = vsub.f32 %v3481_v10, %v3499_v6  ;;  %v3512_v11 = vsub.f32 %v3480_v7, %v3496_v8 }
 0x7e2   :  { %v3525_v13 = vmul.f32 1.442695, %v3513_v9  ;;  %v3523_v23 = vmul.f32 1.442695, %v3512_v11 }
 0x7e3   :  { %v3502_v24 = vpop.xlane.xlu0 %3501  ;;  %v3505_v54 = vpop.xlane.xlu1 %3504 }
 0x7e4   :  { %6933 = vpow2.f32 %v3525_v13  ;;  %v3514_v26 = vsub.f32 %v3482_v12, %v3502_v24  ;;  %v3515_v0 = vsub.f32 %v7745_v25, %v3505_v54 }
 0x7e5   :  { %6935 = vpow2.f32 %v3523_v23 }
 0x7e6   :  { %v6930_v28 = vpop.eup %6929  ;;  %v3527_v29 = vmul.f32 1.442695, %v3514_v26  ;;  %v3529_v2 = vmul.f32 1.442695, %v3515_v0 }
 0x7e7   :  { %v3533_v62 = vsel %vm207_vm2, %v6930_v28, 0.0  ;;  %v3508_v1 = vpop.xlane.xlu0 %3507  ;;  %v7834_v23 = vpop.permute.xlu1 %4417 }
 0x7e8   :  { %3534 = vadd.xlane.f32.xlu1 %v3533_v62  ;;  %6937 = vpow2.f32 %v3527_v29  ;;  %v3516_v49 = vsub.f32 %v7747_v27, %v3508_v1 }
 0x7e9   :  { %6939 = vpow2.f32 %v3529_v2 }
 0x7ea   :  { %v6932_v31 = vpop.eup %6931  ;;  %v3531_v3 = vmul.f32 1.442695, %v3516_v49 }
 0x7eb   :  { %v3539_v5 = vsel %vm207_vm2, %v6932_v31, 0.0  ;;  %v7822_v25 = vpop.permute.xlu0 %4339 }
 0x7ec   :  { %3540 = vadd.xlane.f32.xlu1 %v3539_v5  ;;  %6941 = vpow2.f32 %v3531_v3 }
 0x7ee   :  { %v7784_v48 = vpop.eup %6933 }
 0x7ef   :  { %v7786_v10 = vpop.eup %6935  ;;  %v3545_v7 = vsel %vm207_vm2, %v7784_v48, 0.0 }
 0x7f0   :  { %3546 = vadd.xlane.f32.xlu1 %v3545_v7  ;;  %v3542_v12 = vsel %vm207_vm2, %v7786_v10, 0.0 }
 0x7f1   :  { %3543 = vadd.xlane.f32.xlu0 %v3542_v12 }
 0x7f2   :  { %v7792_v50 = vpop.eup %6937 }
 0x7f3   :  { %v3548_v51 = vsel %vm207_vm2, %v7792_v50, 0.0  ;;  %v7802_v4 = vpop.eup %6939 }
 0x7f4   :  { %v3551_v6 = vsel %vm207_vm2, %v7802_v4, 0.0 }
 0x7f5   :  { %3549 = vadd.xlane.f32.xlu0 %v3548_v51 }
 0x7f6   :  { %v7806_v8 = vpop.eup %6941 }
 0x7f7   :  { %v3554_v9 = vsel %vm207_vm2, %v7806_v8, 0.0 }
 0x801   :  { %4415 = vrot.lane.b32.xlu1 %v7243_v17, %s7135_s13 }
 0x80b   :  { %4337 = vrot.lane.b32.xlu0 %v7245_v18, %s7135_s13 }
 0x825   :  { %3552 = vadd.xlane.f32.xlu1 %v3551_v6 }
 0x82a   :  { %3555 = vadd.xlane.f32.xlu0 %v3554_v9 }
 0x836   :  { %4573 = vrot.lane.b32.xlu1 %v7249_v19, %s7134_s12 }
 0x83a   :  { %4571 = vrot.lane.b32.xlu1 %v7249_v19, %s7135_s13 }
 0x83e   :  { %4729 = vrot.lane.b32.xlu1 %v7255_v21, %s7134_s12 }
 0x840   :  { %4495 = vrot.lane.b32.xlu0 %v7252_v20, %s7134_s12 }
 0x842   :  { %4727 = vrot.lane.b32.xlu1 %v7255_v21, %s7135_s13 }
 0x844   :  { %4493 = vrot.lane.b32.xlu0 %v7252_v20, %s7135_s13 }
 0x848   :  { %4651 = vrot.lane.b32.xlu0 %v7258_v22, %s7134_s12 }
 0x84c   :  { %v3538_v27 = vpop.xlane.xlu0 %3537  ;;  %4649 = vrot.lane.b32.xlu0 %v7258_v22, %s7135_s13 }
 0x84d   :  { %6943 = vrcp.f32 %v3538_v27 }
 0x857   :  { %v6944_v11 = vpop.eup %6943 }
 0x858   :  { %v3566_v13 = vmul.f32 %v6944_v11, %v7770_v53 }
 0x85a   :  { %6691 = vmatmul.mubr.msk.f32.vlgmr.msra.gmra.mrb[48].mxu0 %vm207_vm2, %v3566_v13 }
 0x85b   :  { %6699 = vmatpush3.msra.mxu0 %v7760_v35  ;;  %6700 = vmatprep.mubr.msk.f32.mxu0 %vm7125_vm1, %v7124_v14 }
 0x85c   :  { %6708 = vmatprep.subr.mxu0 %v7124_v14 }
 0x875   :  { %v3535_v24 = vpop.xlane.xlu1 %3534 }
 0x876   :  { %6945 = vrcp.f32 %v3535_v24 }
 0x879   :  { %v3541_v26 = vpop.xlane.xlu1 %3540 }
 0x87a   :  { %6947 = vrcp.f32 %v3541_v26 }
 0x87d   :  { %v3547_v29 = vpop.xlane.xlu1 %3546 }
 0x87e   :  { %6949 = vrcp.f32 %v3547_v29  ;;  %v3544_v62 = vpop.xlane.xlu0 %3543 }
 0x87f   :  { %6951 = vrcp.f32 %v3544_v62 }
 0x880   :  { %v6946_v53 = vpop.eup %6945 }
 0x881   :  { %v3565_v5 = vmul.f32 %v6946_v53, %v6930_v28 }
 0x882   :  { %v3550_v7 = vpop.xlane.xlu0 %3549 }
 0x883   :  { %6953 = vrcp.f32 %v3550_v7  ;;  %6686 = vmatmul.mubr.msk.f32.vlgmr.msra.gmra.mrb[40].mxu1 %vm207_vm2, %v3565_v5 }
 0x884   :  { %v6948_v35 = vpop.eup %6947  ;;  %6694 = vmatpush3.msra.mxu1 %v7758_v33  ;;  %6695 = vmatprep.mubr.msk.f32.mxu1 %vm7125_vm1, %v7124_v14 }
 0x885   :  { %v3567_v12 = vmul.f32 %v6948_v35, %v6932_v31  ;;  %6703 = vmatprep.subr.mxu1 %v7124_v14 }
 0x887   :  { %6696 = vmatmul.mubr.msk.f32.vlgmr.msra.gmra.mrb[42].mxu1 %vm207_vm2, %v3567_v12 }
 0x888   :  { %v6950_v51 = vpop.eup %6949  ;;  %6704 = vmatpush3.msra.mxu1 %v7774_v56  ;;  %6705 = vmatprep.mubr.msk.f32.mxu1 %vm7125_vm1, %v7124_v14 }
 0x889   :  { %v6952_v28 = vpop.eup %6951  ;;  %v3569_v54 = vmul.f32 %v6950_v51, %v7784_v48  ;;  %6713 = vmatprep.subr.mxu1 %v7124_v14  ;;  %v4338_v48 = vpop.permute.xlu0 %4337 }
 0x88a   :  { %v3568_v33 = vmul.f32 %v6952_v28, %v7786_v10 }
 0x88b   :  { %6706 = vmatmul.mubr.msk.f32.vlgmr.msra.gmra.mrb[44].mxu1 %vm207_vm2, %v3569_v54 }
 0x88c   :  { %6701 = vmatmul.mubr.msk.f32.vlgmr.msra.gmra.mrb[50].mxu0 %vm207_vm2, %v3568_v33  ;;  %6714 = vmatpush3.msra.mxu1 %v7776_v58 }
 0x88d   :  { %v6954_v31 = vpop.eup %6953  ;;  %6709 = vmatpush3.msra.mxu0 %v7762_v39  ;;  %6710 = vmatprep.mubr.msk.f32.mxu0 %vm7125_vm1, %v7124_v14  ;;  %v4416_v39 = vpop.permute.xlu1 %4415 }
 0x88e   :  { %v3570_v56 = vmul.f32 %v6954_v31, %v7792_v50  ;;  %6718 = vmatprep.subr.mxu0 %v7124_v14  ;;  %6715 = vmatprep.mubr.msk.f32.mxu1 %vm7125_vm1, %v7124_v14 }
 0x88f   :  { %6723 = vmatprep.subr.mxu1 %v7124_v14 }
 0x890   :  { %6711 = vmatmul.mubr.msk.f32.vlgmr.msra.gmra.mrb[52].mxu0 %vm207_vm2, %v3570_v56 }
 0x891   :  { %6719 = vmatpush3.msra.mxu0 %v7764_v37  ;;  %6720 = vmatprep.mubr.msk.f32.mxu0 %vm7125_vm1, %v7124_v14 }
 0x892   :  { %6728 = vmatprep.subr.mxu0 %v7124_v14 }
 0x8b2   :  { %v3553_v58 = vpop.xlane.xlu1 %3552 }
 0x8b3   :  { %6955 = vrcp.f32 %v3553_v58 }
 0x8b6   :  { %v4574_v2 = vpop.permute.xlu1 %4573 }
 0x8b7   :  { %v3556_v10 = vpop.xlane.xlu0 %3555 }
 0x8b8   :  { %6957 = vrcp.f32 %v3556_v10 }
 0x8bb   :  { %v4496_v0 = vpop.permute.xlu0 %4495 }
 0x8bd   :  { %v6956_v50 = vpop.eup %6955 }
 0x8be   :  { %v3571_v1 = vmul.f32 %v6956_v50, %v7802_v4 }
 0x8bf   :  { %v4494_v3 = vpop.permute.xlu0 %4493 }
 0x8c0   :  { %6716 = vmatmul.mubr.msk.f32.vlgmr.msra.gmra.mrb[46].mxu1 %vm207_vm2, %v3571_v1 }
 0x8c1   :  { %6724 = vmatpush3.xpose.msk.msra.mxu1 %vm207_vm2, %v7778_v60  ;;  %6725 = vmatprep.mubr.msk.f32.mxu1 %vm7125_vm1, %v7124_v14  ;;  %v4572_v60 = vpop.permute.xlu1 %4571 }
 0x8c2   :  { %v6958_v37 = vpop.eup %6957  ;;  %6733 = vmatprep.subr.mxu1 %v7124_v14 }
 0x8c3   :  { %v3572_v49 = vmul.f32 %v6958_v37, %v7806_v8 }
 0x8c4   :  { %6726 = vmatmul.mubr.msk.f32.vlgmr.msra.gmra.mrb[48].mxu1 %vm207_vm2, %v7780_v61  ;;  %v4652_v61 = vpop.permute.xlu0 %4651 }
 0x8c5   :  { %6721 = vmatmul.mubr.msk.f32.vlgmr.msra.gmra.mrb[54].mxu0 %vm207_vm2, %v3572_v49  ;;  %6734 = vmatpush3.xpose.msk.msra.mxu1 %vm207_vm2, %v7822_v25 }
 0x8c6   :  { %6729 = vmatpush3.xpose.msk.msra.mxu0 %vm207_vm2, %v7766_v42  ;;  %6730 = vmatprep.mubr.msk.f32.mxu0 %vm7125_vm1, %v7124_v14  ;;  %v4730_v42 = vpop.permute.xlu1 %4729 }
 0x8c7   :  { %6735 = vmatprep.mubr.msk.f32.mxu1 %vm7125_vm1, %v7124_v14  ;;  %6738 = vmatprep.subr.mxu0 %v7124_v14 }
 0x8c8   :  { %6743 = vmatprep.subr.mxu1 %v7124_v14  ;;  %6736 = vmatmul.mubr.msk.f32.vlgmr.msra.gmra.mrb[50].mxu1 %vm207_vm2, %v4338_v48 }
 0x8c9   :  { %6731 = vmatmul.mubr.msk.f32.vlgmr.msra.gmra.mrb[56].mxu0 %vm207_vm2, %v7768_v46  ;;  %6744 = vmatpush3.xpose.msk.msra.mxu1 %vm207_vm2, %v4496_v0  ;;  %v4650_v46 = vpop.permute.xlu0 %4649 }
 0x8ca   :  { %6739 = vmatpush3.xpose.msk.msra.mxu0 %vm207_vm2, %v7834_v23  ;;  %6740 = vmatprep.mubr.msk.f32.mxu0 %vm7125_vm1, %v7124_v14  ;;  %v4728_v4 = vpop.permute.xlu1 %4727 }
 0x8cb   :  { %6745 = vmatprep.mubr.msk.f32.mxu1 %vm7125_vm1, %v7124_v14  ;;  %6748 = vmatprep.subr.mxu0 %v7124_v14 }
 0x8cc   :  { %6753 = vmatprep.subr.mxu1 %v7124_v14  ;;  %6746 = vmatmul.mubr.msk.f32.vlgmr.msra.gmra.mrb[52].mxu1 %vm207_vm2, %v4494_v3 }
 0x8cd   :  { %6741 = vmatmul.mubr.msk.f32.vlgmr.msra.gmra.mrb[58].mxu0 %vm207_vm2, %v4416_v39  ;;  %6754 = vmatpush3.xpose.msk.msra.mxu1 %vm207_vm2, %v4652_v61 }
 0x8ce   :  { %6749 = vmatpush3.xpose.msk.msra.mxu0 %vm207_vm2, %v4574_v2  ;;  %6750 = vmatprep.mubr.msk.f32.mxu0 %vm7125_vm1, %v7124_v14 }
 0x8cf   :  { %6755 = vmatprep.mubr.msk.f32.mxu1 %vm7125_vm1, %v7124_v14  ;;  %6758 = vmatprep.subr.mxu0 %v7124_v14 }
 0x8d0   :  { %6756 = vmatmul.mubr.msk.f32.vlgmr.msra.gmra.mrb[54].mxu1 %vm207_vm2, %v4650_v46  ;;  %6763 = vmatprep.subr.mxu1 %v7124_v14 }
 0x8d1   :  { %6751 = vmatmul.mubr.msk.f32.vlgmr.msra.gmra.mrb[60].mxu0 %vm207_vm2, %v4572_v60  ;;  %6765 = vmatprep.mubr.msk.f32.mxu1 %vm7125_vm1, %v7124_v14 }
 0x8d2   :  { %6759 = vmatpush3.xpose.msk.msra.mxu0 %vm207_vm2, %v4730_v42  ;;  %6760 = vmatprep.mubr.msk.f32.mxu0 %vm7125_vm1, %v7124_v14 }
 0x8d3   :  { %6768 = vmatprep.subr.mxu0 %v7124_v14 }
 0x8d5   :  { %6761 = vmatmul.mubr.msk.f32.vlgmr.msra.gmra.mrb[62].mxu0 %vm207_vm2, %v4728_v4 }
 0x8d6   :  { %6770 = vmatprep.mubr.msk.f32.mxu0 %vm7125_vm1, %v7124_v14 }
 0x92d   :  { %v7918_v6 = vpop.f32.mrb[48].mxu0 }
 0x92e   :  { %v6692_v8 = vpop.f32.mrb[49].mxu0 }
 0x956   :  { %v7920_v9 = vpop.f32.mrb[40].mxu1 }
 0x957   :  { %v6687_v25 = vpop.f32.mrb[41].mxu1 }
 0x95a   :  { %v7922_v27 = vpop.f32.mrb[42].mxu1 }
 0x95b   :  { %v6697_v11 = vpop.f32.mrb[43].mxu1 }
 0x95e   :  { %v7924_v13 = vpop.f32.mrb[44].mxu1 }
 0x95f   :  { %v7926_v23 = vpop.f32.mrb[50].mxu0  ;;  %v6707_v24 = vpop.f32.mrb[45].mxu1 }
 0x960   :  { %v6702_v26 = vpop.f32.mrb[51].mxu0 }
 0x963   :  { %v7928_v29 = vpop.f32.mrb[52].mxu0 }
 0x964   :  { %v6712_v62 = vpop.f32.mrb[53].mxu0 }
 0x993   :  { %v7930_v53 = vpop.f32.mrb[46].mxu1 }
 0x994   :  { %v6717_v5 = vpop.f32.mrb[47].mxu1 }
 0x997   :  { %v4255_v7 = vpop.f32.mrb[48].mxu1 }
 0x998   :  { %v7932_v35 = vpop.f32.mrb[54].mxu0  ;;  %v4805_v12 = vmul.f32 0.35355338, %v4255_v7  ;;  %v6727_v51 = vpop.f32.mrb[49].mxu1 }
 0x999   :  { %v6722_v28 = vpop.f32.mrb[55].mxu0 }
 0x99a   :  { %v4813_v54 = vsel %vm207_vm2, %v4805_v12, -inf }
 0x99b   :  { %4814 = vmax.xlane.f32.xlu0 %v4813_v54  ;;  %v4411_v33 = vpop.f32.mrb[50].mxu1 }
 0x99c   :  { %v4333_v31 = vpop.f32.mrb[56].mxu0  ;;  %v4807_v56 = vmul.f32 0.35355338, %v4411_v33  ;;  %v6737_v39 = vpop.f32.mrb[51].mxu1 }
 0x99d   :  { %v4806_v58 = vmul.f32 0.35355338, %v4333_v31  ;;  %v6732_v48 = vpop.f32.mrb[57].mxu0 }
 0x99e   :  { %v4819_v10 = vsel %vm207_vm2, %v4807_v56, -inf }
 0x99f   :  { %4820 = vmax.xlane.f32.xlu0 %v4819_v10  ;;  %v4567_v50 = vpop.f32.mrb[52].mxu1  ;;  %v4816_v0 = vsel %vm207_vm2, %v4806_v58, -inf }
 0x9a0   :  { %v4809_v1 = vmul.f32 0.35355338, %v4567_v50  ;;  %4817 = vmax.xlane.f32.xlu1 %v4816_v0  ;;  %v4489_v37 = vpop.f32.mrb[58].mxu0  ;;  %v6747_v2 = vpop.f32.mrb[53].mxu1 }
 0x9a1   :  { %v4808_v49 = vmul.f32 0.35355338, %v4489_v37  ;;  %v6742_v3 = vpop.f32.mrb[59].mxu0 }
 0x9a2   :  { %v4825_v60 = vsel %vm207_vm2, %v4809_v1, -inf }
 0x9a3   :  { %v4723_v61 = vpop.f32.mrb[54].mxu1  ;;  %v4822_v42 = vsel %vm207_vm2, %v4808_v49, -inf }
 0x9a4   :  { %v4811_v46 = vmul.f32 0.35355338, %v4723_v61  ;;  %4826 = vmax.xlane.f32.xlu1 %v4825_v60  ;;  %4823 = vmax.xlane.f32.xlu0 %v4822_v42  ;;  %v4645_v4 = vpop.f32.mrb[60].mxu0  ;;  %v6757_v8 = vpop.f32.mrb[55].mxu1 }
 0x9a5   :  { %v4810_v25 = vmul.f32 0.35355338, %v4645_v4  ;;  %v6752_v11 = vpop.f32.mrb[61].mxu0 }
 0x9a6   :  { %v4831_v24 = vsel %vm207_vm2, %v4811_v46, -inf }
 0x9a7   :  { %v4828_v26 = vsel %vm207_vm2, %v4810_v25, -inf }
 0x9a8   :  { %4832 = vmax.xlane.f32.xlu1 %v4831_v24  ;;  %4829 = vmax.xlane.f32.xlu0 %v4828_v26  ;;  %v4801_v62 = vpop.f32.mrb[62].mxu0 }
 0x9a9   :  { %v4812_v5 = vmul.f32 0.35355338, %v4801_v62  ;;  %v6762_v7 = vpop.f32.mrb[63].mxu0 }
 0x9ab   :  { %v4834_v51 = vsel %vm207_vm2, %v4812_v5, -inf }
 0x9ac   :  { %4835 = vmax.xlane.f32.xlu0 %v4834_v51 }
 0x9b9   :  { %4901 = vrot.lane.b32.xlu1 %v7240_v16, %s7136_s14 }
 0x9bd   :  { %5053 = vrot.lane.b32.xlu1 %v7245_v18, %s7136_s14 }
 0x9c1   :  { %5129 = vrot.lane.b32.xlu1 %v7243_v17, %s7136_s14 }
 0x9c2   :  { %4977 = vrot.lane.b32.xlu0 %v7237_v15, %s7136_s14 }
 0x9c5   :  { %5281 = vrot.lane.b32.xlu1 %v7249_v19, %s7136_s14 }
 0x9c6   :  { %5205 = vrot.lane.b32.xlu0 %v7252_v20, %s7136_s14 }
 0xa28   :  { %v4815_v28 = vpop.xlane.xlu0 %4814 }
 0xa29   :  { %v4837_v54 = vsub.f32 %v4805_v12, %v4815_v28 }
 0xa2b   :  { %v4845_v33 = vmul.f32 1.442695, %v4837_v54 }
 0xa2c   :  { %v4821_v31 = vpop.xlane.xlu0 %4820 }
 0xa2d   :  { %6959 = vpow2.f32 %v4845_v33  ;;  %v4839_v16 = vsub.f32 %v4807_v56, %v4821_v31  ;;  %v4818_v39 = vpop.xlane.xlu1 %4817 }
 0xa2e   :  { %v4838_v18 = vsub.f32 %v4806_v58, %v4818_v39 }
 0xa2f   :  { %v4849_v48 = vmul.f32 1.442695, %v4839_v16 }
 0xa30   :  { %v4847_v10 = vmul.f32 1.442695, %v4838_v18 }
 0xa31   :  { %6961 = vpow2.f32 %v4849_v48  ;;  %v4827_v17 = vpop.xlane.xlu1 %4826  ;;  %v4824_v50 = vpop.xlane.xlu0 %4823 }
 0xa32   :  { %6963 = vpow2.f32 %v4847_v10  ;;  %v4841_v15 = vsub.f32 %v4809_v1, %v4827_v17  ;;  %v4840_v0 = vsub.f32 %v4808_v49, %v4824_v50 }
 0xa34   :  { %v4853_v19 = vmul.f32 1.442695, %v4841_v15  ;;  %v4851_v37 = vmul.f32 1.442695, %v4840_v0 }
 0xa35   :  { %v4833_v2 = vpop.xlane.xlu1 %4832  ;;  %v4830_v20 = vpop.xlane.xlu0 %4829 }
 0xa36   :  { %6965 = vpow2.f32 %v4853_v19  ;;  %v4843_v12 = vsub.f32 %v4811_v46, %v4833_v2  ;;  %v4842_v3 = vsub.f32 %v4810_v25, %v4830_v20 }
 0xa37   :  { %v7954_v60 = vpop.eup %6959  ;;  %6967 = vpow2.f32 %v4851_v37 }
 0xa38   :  { %v4857_v56 = vmul.f32 1.442695, %v4843_v12  ;;  %v4855_v58 = vmul.f32 1.442695, %v4842_v3  ;;  %v4861_v61 = vsel %vm207_vm2, %v7954_v60, 0.0  ;;  %v5631_v12 = vld [vmem:[#allocation7] sm:$0xff] }
 0xa39   :  { %v4902_v42 = vpop.permute.xlu1 %4901  ;;  %v4836_v4 = vpop.xlane.xlu0 %4835  ;;  %4862 = vadd.xlane.f32.xlu1 %v4861_v61  ;;  %v5632_v3 = vld [vmem:[#allocation7 + $0x8] sm:$0xff] }
 0xa3a   :  { %6969 = vpow2.f32 %v4857_v56  ;;  %v4844_v1 = vsub.f32 %v4812_v5, %v4836_v4  ;;  %6764 = vmatpush3.msra.mxu1 %v4902_v42  ;;  %v5633_v56 = vld [vmem:[#allocation7 + $0x10] sm:$0xff] }
 0xa3b   :  { %v7958_v49 = vpop.eup %6961  ;;  %6971 = vpow2.f32 %v4855_v58  ;;  %6773 = vmatprep.subr.mxu1 %v7124_v14  ;;  %v5634_v58 = vld [vmem:[#allocation7 + $0x18] sm:$0xff] }
 0xa3c   :  { %v7961_v46 = vpop.eup %6963  ;;  %v4859_v8 = vmul.f32 1.442695, %v4844_v1  ;;  %v4867_v25 = vsel %vm207_vm2, %v7958_v49, 0.0  ;;  %v6835_v61 = vpack.c.bf16 %v5634_v58, %v5633_v56 }
 0xa3d   :  { %v4978_v11 = vpop.permute.xlu0 %4977  ;;  %4868 = vadd.xlane.f32.xlu1 %v4867_v25  ;;  %v4864_v24 = vsel %vm207_vm2, %v7961_v46, 0.0 }
 0xa3e   :  { %6973 = vpow2.f32 %v4859_v8  ;;  %4865 = vadd.xlane.f32.xlu0 %v4864_v24  ;;  %6769 = vmatpush3.msra.mxu0 %v4978_v11 }
 0xa3f   :  { %6778 = vmatprep.subr.mxu0 %v7124_v14 }
 0xa40   :  { %v7968_v26 = vpop.eup %6965 }
 0xa41   :  { %v7970_v62 = vpop.eup %6967  ;;  %v4873_v5 = vsel %vm207_vm2, %v7968_v26, 0.0 }
 0xa42   :  { %4874 = vadd.xlane.f32.xlu1 %v4873_v5  ;;  %v4870_v7 = vsel %vm207_vm2, %v7970_v62, 0.0 }
 0xa43   :  { %4871 = vadd.xlane.f32.xlu0 %v4870_v7 }
 0xa44   :  { %v7976_v51 = vpop.eup %6969 }
 0xa45   :  { %v7978_v28 = vpop.eup %6971  ;;  %v4879_v54 = vsel %vm207_vm2, %v7976_v51, 0.0 }
 0xa46   :  { %4880 = vadd.xlane.f32.xlu1 %v4879_v54  ;;  %v4876_v33 = vsel %vm207_vm2, %v7978_v28, 0.0 }
 0xa47   :  { %4877 = vadd.xlane.f32.xlu0 %v4876_v33 }
 0xa48   :  { %v7984_v31 = vpop.eup %6973 }
 0xa49   :  { %v4882_v16 = vsel %vm207_vm2, %v7984_v31, 0.0 }
 0xa4b   :  { %4883 = vadd.xlane.f32.xlu0 %v4882_v16 }
 0xa57   :  { %5433 = vrot.lane.b32.xlu1 %v7255_v21, %s7136_s14  ;;  %v5054_v21 = vpop.permute.xlu1 %5053 }
 0xa5b   :  { %5519 = vrot.lane.b32.xlu1 %v7724_v30, %s7122_s6 }
 0xa5f   :  { %5551 = vrot.lane.b32.xlu1 %v7918_v6, %s7137_s15 }
 0xa61   :  { %5357 = vrot.lane.b32.xlu0 %v7258_v22, %s7136_s14  ;;  %v5130_v22 = vpop.permute.xlu1 %5129 }
 0xa63   :  { %5523 = vrot.lane.b32.xlu1 %v7732_v38, %s7122_s6 }
 0xa65   :  { %5517 = vrot.lane.b32.xlu0 %v7726_v32, %s7122_s6  ;;  %v5282_v30 = vpop.permute.xlu1 %5281 }
 0xa67   :  { %5555 = vrot.lane.b32.xlu1 %v7926_v23, %s7137_s15 }
 0xa69   :  { %5549 = vrot.lane.b32.xlu0 %v7920_v9, %s7137_s15 }
 0xa6b   :  { %5527 = vrot.lane.b32.xlu1 %v7734_v40, %s7122_s6 }
 0xa6d   :  { %5521 = vrot.lane.b32.xlu0 %v7728_v34, %s7122_s6  ;;  %v5206_v34 = vpop.permute.xlu0 %5205 }
 0xa6f   :  { %5559 = vrot.lane.b32.xlu1 %v7928_v29, %s7137_s15 }
 0xa71   :  { %5553 = vrot.lane.b32.xlu0 %v7922_v27, %s7137_s15 }
 0xa73   :  { %5531 = vrot.lane.b32.xlu1 %v7736_v44, %s7122_s6 }
 0xa75   :  { %5525 = vrot.lane.b32.xlu0 %v7730_v36, %s7122_s6 }
 0xa77   :  { %5563 = vrot.lane.b32.xlu1 %v7932_v35, %s7137_s15 }
 0xa79   :  { %5557 = vrot.lane.b32.xlu0 %v7924_v13, %s7137_s15 }
 0xa7d   :  { %5529 = vrot.lane.b32.xlu0 %v7739_v57, %s7122_s6  ;;  %s7138_s6 = smov 24  }
 0xa81   :  { %5561 = vrot.lane.b32.xlu0 %v7930_v53, %s7137_s15 }
 0xac6   :  { %v4863_v32 = vpop.xlane.xlu1 %4862 }
 0xac7   :  { %6975 = vrcp.f32 %v4863_v32 }
 0xaca   :  { %v4869_v38 = vpop.xlane.xlu1 %4868 }
 0xacb   :  { %6977 = vrcp.f32 %v4869_v38  ;;  %v4866_v40 = vpop.xlane.xlu0 %4865 }
 0xacc   :  { %6979 = vrcp.f32 %v4866_v40 }
 0xacf   :  { %v4875_v36 = vpop.xlane.xlu1 %4874 }
 0xad0   :  { %6981 = vrcp.f32 %v4875_v36  ;;  %v4872_v44 = vpop.xlane.xlu0 %4871 }
 0xad1   :  { %v6976_v6 = vpop.eup %6975  ;;  %6983 = vrcp.f32 %v4872_v44 }
 0xad2   :  { %v4893_v9 = vmul.f32 %v6976_v6, %v7954_v60  ;;  %v6831_v60 = vpack.c.bf16 %v5632_v3, %v5631_v12 }
 0xad3   :  { %v4881_v57 = vpop.xlane.xlu1 %4880 }
 0xad4   :  { %6985 = vrcp.f32 %v4881_v57  ;;  %v4878_v27 = vpop.xlane.xlu0 %4877  ;;  %6766 = vmatmul.mubr.msk.f32.vlgmr.msra.gmra.mrb[56].mxu1 %vm207_vm2, %v4893_v9 }
 0xad5   :  { %v6978_v13 = vpop.eup %6977  ;;  %6987 = vrcp.f32 %v4878_v27  ;;  %6774 = vmatpush3.msra.mxu1 %v5054_v21  ;;  %6775 = vmatprep.mubr.msk.f32.mxu1 %vm7125_vm1, %v7124_v14 }
 0xad6   :  { %v6980_v23 = vpop.eup %6979  ;;  %v4895_v29 = vmul.f32 %v6978_v13, %v7958_v49  ;;  %6783 = vmatprep.subr.mxu1 %v7124_v14 }
 0xad7   :  { %v4894_v53 = vmul.f32 %v6980_v23, %v7961_v46  ;;  %v5434_v37 = vpop.permute.xlu1 %5433 }
 0xad8   :  { %v4884_v35 = vpop.xlane.xlu0 %4883  ;;  %6776 = vmatmul.mubr.msk.f32.vlgmr.msra.gmra.mrb[58].mxu1 %vm207_vm2, %v4895_v29 }
 0xad9   :  { %6989 = vrcp.f32 %v4884_v35  ;;  %6771 = vmatmul.mubr.msk.f32.vlgmr.msra.gmra.mrb[64].mxu0 %vm207_vm2, %v4894_v53  ;;  %6784 = vmatpush3.msra.mxu1 %v5206_v34 }
 0xada   :  { %v6982_v39 = vpop.eup %6981  ;;  %6779 = vmatpush3.msra.mxu0 %v5130_v22  ;;  %6780 = vmatprep.mubr.msk.f32.mxu0 %vm7125_vm1, %v7124_v14 }
 0xadb   :  { %v6984_v18 = vpop.eup %6983  ;;  %v4897_v48 = vmul.f32 %v6982_v39, %v7968_v26  ;;  %6785 = vmatprep.mubr.msk.f32.mxu1 %vm7125_vm1, %v7124_v14  ;;  %6788 = vmatprep.subr.mxu0 %v7124_v14  ;;  %v5520_v33 = vpop.permute.xlu1 %5519 }
 0xadc   :  { %v4896_v10 = vmul.f32 %v6984_v18, %v7970_v62  ;;  %v5358_v17 = vpop.permute.xlu0 %5357  ;;  %6793 = vmatprep.subr.mxu1 %v7124_v14  ;;  %v5606_v35 = vsel %vm207_vm2, %v7503_v41, %v5520_v33 }
 0xadd   :  { %6786 = vmatmul.mubr.msk.f32.vlgmr.msra.gmra.mrb[60].mxu1 %vm207_vm2, %v4897_v48 }
 0xade   :  { %v6986_v50 = vpop.eup %6985  ;;  %6781 = vmatmul.mubr.msk.f32.vlgmr.msra.gmra.mrb[66].mxu0 %vm207_vm2, %v4896_v10  ;;  %6794 = vmatpush3.msra.mxu1 %v5358_v17 }
 0xadf   :  { %v6988_v15 = vpop.eup %6987  ;;  %v4899_v0 = vmul.f32 %v6986_v50, %v7976_v51  ;;  %6789 = vmatpush3.msra.mxu0 %v5282_v30  ;;  %6790 = vmatprep.mubr.msk.f32.mxu0 %vm7125_vm1, %v7124_v14  ;;  %v5552_v16 = vpop.permute.xlu1 %5551 }
 0xae0   :  { %v4898_v19 = vmul.f32 %v6988_v15, %v7978_v28  ;;  %6795 = vmatprep.mubr.msk.f32.mxu1 %vm7125_vm1, %v7124_v14  ;;  %6798 = vmatprep.subr.mxu0 %v7124_v14  ;;  %v5518_v54 = vpop.permute.xlu0 %5517 }
 0xae1   :  { %6796 = vmatmul.mubr.msk.f32.vlgmr.msra.gmra.mrb[62].mxu1 %vm207_vm2, %v4899_v0  ;;  %6832 = vmatprep.subr.bf16.mxu1 %v6831_v60  ;;  %v5605_v57 = vsel %vm207_vm2, %v7511_v52, %v5518_v54  ;;  %v5615_v52 = vsel %vm5613_vm4, %v5606_v35, %v5552_v16 }
 0xae2   :  { %6791 = vmatmul.mubr.msk.f32.vlgmr.msra.gmra.mrb[68].mxu0 %vm207_vm2, %v4898_v19  ;;  %6834 = vmatpush3.bf16.msra.mxu1 %v6831_v60 }
 0xae3   :  { %v6990_v2 = vpop.eup %6989  ;;  %6799 = vmatpush3.msra.mxu0 %v5434_v37  ;;  %6800 = vmatprep.mubr.msk.f32.mxu0 %vm7125_vm1, %v7124_v14  ;;  %v5524_v22 = vpop.permute.xlu1 %5523 }
 0xae4   :  { %v4900_v20 = vmul.f32 %v6990_v2, %v7984_v31  ;;  %6836 = vmatprep.subr.bf16.mxu1 %v6835_v61  ;;  %v5550_v31 = vpop.permute.xlu0 %5549  ;;  %v5608_v41 = vsel %vm207_vm2, %v7505_v43, %v5524_v22 }
 0xae5   :  { %v5614_v27 = vsel %vm5613_vm4, %v5605_v57, %v5550_v31 }
 0xae6   :  { %6801 = vmatmul.mubr.msk.f32.vlgmr.msra.gmra.mrb[70].mxu0 %vm207_vm2, %v4900_v20  ;;  %6838 = vmatpush3.bf16.msra.mxu1 %v6835_v61 }
 0xae7   :  { %v5556_v32 = vpop.permute.xlu1 %5555 }
 0xae8   :  { %v5522_v21 = vpop.permute.xlu0 %5521  ;;  %v5617_v0 = vsel %vm5613_vm4, %v5608_v41, %v5556_v32 }
 0xae9   :  { %v5607_v53 = vsel %vm207_vm2, %v7514_v55, %v5522_v21 }
 0xaeb   :  { %v5528_v38 = vpop.permute.xlu1 %5527 }
 0xaec   :  { %v5554_v30 = vpop.permute.xlu0 %5553  ;;  %v5610_v43 = vsel %vm207_vm2, %v7507_v45, %v5528_v38 }
 0xaed   :  { %v5616_v39 = vsel %vm5613_vm4, %v5607_v53, %v5554_v30 }
 0xaef   :  { %v5560_v36 = vpop.permute.xlu1 %5559 }
 0xaf0   :  { %v5526_v34 = vpop.permute.xlu0 %5525  ;;  %v5619_v3 = vsel %vm5613_vm4, %v5610_v43, %v5560_v36 }
 0xaf1   :  { %v5609_v55 = vsel %vm207_vm2, %v7516_v59, %v5526_v34 }
 0xaf3   :  { %v5532_v6 = vpop.permute.xlu1 %5531 }
 0xaf4   :  { %v5558_v40 = vpop.permute.xlu0 %5557  ;;  %v5612_v45 = vsel %vm207_vm2, %v7509_v47, %v5532_v6 }
 0xaf5   :  { %v5618_v50 = vsel %vm5613_vm4, %v5609_v55, %v5558_v40 }
 0xaf7   :  { %v5564_v23 = vpop.permute.xlu1 %5563 }
 0xaf8   :  { %v5530_v44 = vpop.permute.xlu0 %5529  ;;  %v5621_v58 = vsel %vm5613_vm4, %v5612_v45, %v5564_v23  ;;  %v5818_v23 = vlaneseq }
 0xaf9   :  { %v5611_v59 = vsel %vm207_vm2, %v7518_v63, %v5530_v44 }
 0xafa   :  { %v5819_v53 = vand.u32 127, %v5818_v23  ;;  %v8118_v35 = vshrl.u32 %v5818_v23, 7 }
 0xafc   :  { %v5562_v9 = vpop.permute.xlu0 %5561 }
 0xafd   :  { %v5620_v20 = vsel %vm5613_vm4, %v5611_v59, %v5562_v9 }
 0xba7   :  { %v4973_v42 = vpop.f32.mrb[56].mxu1 }
 0xba8   :  { %v6767_v4 = vpop.f32.mrb[57].mxu1  ;;  %5581 = vrot.lane.b32.xlu0 %v4973_v42, %s7138_s6 }
 0xba9   :  { %v6301_v4 = vld [vmem:[%s8234_s3] ss:$0 sm:$0xff]  ;;  %s7140_s3 = smov [#allocation8]  }
 0xbab   :  { %v5125_v1 = vpop.f32.mrb[58].mxu1 }
 0xbac   :  { %v5049_v14 = vpop.f32.mrb[64].mxu0  ;;  %v6777_v49 = vpop.f32.mrb[59].mxu1  ;;  %5585 = vrot.lane.b32.xlu0 %v5125_v1, %s7138_s6 }
 0xbad   :  { %5583 = vrot.lane.b32.xlu1 %v5049_v14, %s7138_s6  ;;  %v6772_v46 = vpop.f32.mrb[65].mxu0 }
 0xbb0   :  { %v5277_v8 = vpop.f32.mrb[60].mxu1 }
 0xbb1   :  { %v5201_v25 = vpop.f32.mrb[66].mxu0  ;;  %5589 = vrot.lane.b32.xlu0 %v5277_v8, %s7138_s6  ;;  %v6787_v11 = vpop.f32.mrb[61].mxu1 }
 0xbb2   :  { %5587 = vrot.lane.b32.xlu1 %v5201_v25, %s7138_s6  ;;  %v6782_v24 = vpop.f32.mrb[67].mxu0 }
 0xbb4   :  { %v5429_v26 = vpop.f32.mrb[62].mxu1 }
 0xbb5   :  { %v5353_v62 = vpop.f32.mrb[68].mxu0  ;;  %5593 = vrot.lane.b32.xlu0 %v5429_v26, %s7138_s6  ;;  %v6797_v5 = vpop.f32.mrb[63].mxu1 }
 0xbb6   :  { %5591 = vrot.lane.b32.xlu1 %v5353_v62, %s7138_s6  ;;  %v6792_v7 = vpop.f32.mrb[69].mxu0 }
 0xbb7   :  { %v6310_v7 = vld [vmem:[%s8235_s4] ss:$0 sm:$0xff]  ;;  %s6187_s4 = sshll.u32 %s7140_s3, 4  ;;  %s6188_s4 = int_to_ptr.vmem [resolvable:$true] %s6187_s4 }
 0xbb8   :  { %s7091_s19 = scalar_lea.vmem %s6188_s4, 128  ;;  %p7096_p11 = scmp.lt.s32.totalorder %s6188_s4, %s6188_s4 }
 0xbb9   :  { %v5505_v51 = vpop.f32.mrb[70].mxu0  ;;  %p7092_p10 = scmp.ne.s32.totalorder %s6188_s4, %s7091_s19  ;;  %p7097_p12 = scmp.lt.s32.totalorder %s7091_s19, %s7091_s19 }
 0xbba   :  { %5595 = vrot.lane.b32.xlu1 %v5505_v51, %s7138_s6  ;;  %v6802_v28 = vpop.f32.mrb[71].mxu0 }
 0xbbb   :  { %p7098_p13 = por %p7097_p12, %p7096_p11 }
 0xbbd   :  { %p7099_p0 = pnand %p7098_p13, %p7092_p10 }
 0xc1a   :  { %v5582_v13 = vpop.permute.xlu0 %5581 }
 0xc1b   :  { %v8052_v29 = vsel %vm5622_vm3, %v5614_v27, %v5582_v13 }
 0xc1c   :  { %6811 = vmatprep.mubr.msk.f32.mxu1 %vm74_vm0, %v8052_v29 }
 0xc1e   :  { %v5586_v18 = vpop.permute.xlu0 %5585 }
 0xc1f   :  { %v8063_v48 = vsel %vm5622_vm3, %v5616_v39, %v5586_v18  ;;  %v5584_v10 = vpop.permute.xlu1 %5583  ;;  %v8121_v18 = vsub.s32 %v5819_v53, %v8118_v35 }
 0xc20   :  { %v8066_v17 = vsel %vm5622_vm3, %v5615_v52, %v5584_v10 }
 0xc21   :  { %6812 = vmatmul.mubr.msk.f32.vlgmr.msra.gmra.mrb[64].mxu1 %vm74_vm0, %v8066_v17 }
 0xc22   :  { %6814 = vmatprep.mubr.msk.f32.mxu1 %vm74_vm0, %v8063_v48 }
 0xc23   :  { %v5590_v15 = vpop.permute.xlu0 %5589 }
 0xc24   :  { %v8079_v19 = vsel %vm5622_vm3, %v5618_v50, %v5590_v15  ;;  %v5588_v37 = vpop.permute.xlu1 %5587 }
 0xc25   :  { %v8082_v2 = vsel %vm5622_vm3, %v5617_v0, %v5588_v37 }
 0xc26   :  { %6815 = vmatmul.mubr.msk.f32.gmra.mrb[66].mxu1 %vm74_vm0, %v8082_v2 }
 0xc27   :  { %6817 = vmatprep.mubr.msk.f32.mxu1 %vm74_vm0, %v8079_v19  ;;  %v5594_v12 = vpop.permute.xlu0 %5593 }
 0xc28   :  { %v8095_v60 = vsel %vm5622_vm3, %v5620_v20, %v5594_v12  ;;  %v5592_v56 = vpop.permute.xlu1 %5591 }
 0xc29   :  { %v8098_v63 = vsel %vm5622_vm3, %v5619_v3, %v5592_v56 }
 0xc2a   :  { %6818 = vmatmul.mubr.msk.f32.gmra.mrb[68].mxu1 %vm74_vm0, %v8098_v63 }
 0xc2b   :  { %6820 = vmatprep.mubr.msk.f32.mxu1 %vm74_vm0, %v8095_v60 }
 0xc2c   :  { %v5596_v61 = vpop.permute.xlu1 %5595 }
 0xc2d   :  { %v8108_v42 = vsel %vm5622_vm3, %v5621_v58, %v5596_v61 }
 0xc2e   :  { %6821 = vmatmul.mubr.msk.f32.gmra.mrb[70].mxu1 %vm74_vm0, %v8108_v42 }
 0xcf4   :  { %v6813_v1 = vpop.f32.mrb[64].mxu1 }
 0xcf5   :  { %v5738_v14 = vadd.f32 %v6813_v1, %v6301_v4  ;;  %v5732_v49 = vpop.f32.mrb[65].mxu1 }
 0xcf6   :  { %v5733_v47 = vadd.f32 %v6301_v4, %v5732_v49 }
 0xcf7   :  { %6991 = vtanh.f32 %v5738_v14 }
 0xcf8   :  { %6993 = vtanh.f32 %v5733_v47 }
 0xcf9   :  { %v6816_v46 = vpop.f32.mrb[66].mxu1 }
 0xcfa   :  { %v5748_v8 = vadd.f32 %v6816_v46, %v6301_v4  ;;  %v5742_v25 = vpop.f32.mrb[67].mxu1 }
 0xcfb   :  { %v5743_v11 = vadd.f32 %v6301_v4, %v5742_v25  ;;  %v5873_v25 = vsub.s32 0, %v8118_v35 }
 0xcfc   :  { %6995 = vtanh.f32 %v5748_v8  ;;  %v7139_v8 = vmov 0  }
 0xcfd   :  { %v6819_v24 = vpop.f32.mrb[68].mxu1  ;;  %6997 = vtanh.f32 %v5743_v11  ;;  %6862 = vset.pattern.permute.xlu1 %v7139_v8  ;;  %6861 = vset.pattern.permute.xlu0 %v7139_v8  ;;  %v5877_v11 = vsub.s32 1, %v8118_v35 }
 0xcfe   :  { %v5758_v26 = vadd.f32 %v6819_v24, %v6301_v4  ;;  %v5752_v62 = vpop.f32.mrb[69].mxu1  ;;  %v5881_v24 = vsub.s32 2, %v8118_v35 }
 0xcff   :  { %v5753_v5 = vadd.f32 %v6301_v4, %v5752_v62 }
 0xd01   :  { %v6992_v51 = vpop.eup %6991  ;;  %6999 = vtanh.f32 %v5753_v5  ;;  %v6822_v28 = vpop.f32.mrb[70].mxu1 }
 0xd02   :  { %v6994_v54 = vpop.eup %6993  ;;  %7001 = vtanh.f32 %v5758_v26  ;;  %v5768_v33 = vadd.f32 %v6822_v28, %v6301_v4  ;;  %v5762_v31 = vpop.f32.mrb[71].mxu1  ;;  %v5787_v16 = vmul.f32 %v6992_v51, %v6310_v7  ;;  %v5885_v26 = vsub.s32 3, %v8118_v35 }
 0xd03   :  { %v5763_v21 = vadd.f32 %v6301_v4, %v5762_v31  ;;  %v5786_v22 = vmul.f32 %v6994_v54, %v6310_v7 }
 0xd04   :  { %5796 = vadd.xlane.f32.xlu1 %v5787_v16 }
 0xd05   :  { %7003 = vtanh.f32 %v5763_v21  ;;  %5794 = vadd.xlane.f32.xlu0 %v5786_v22 }
 0xd06   :  { %v6996_v30 = vpop.eup %6995  ;;  %7005 = vtanh.f32 %v5768_v33  ;;  %v5889_v33 = vsub.s32 4, %v8118_v35 }
 0xd07   :  { %v5789_v32 = vmul.f32 %v6996_v30, %v6310_v7  ;;  %v6998_v34 = vpop.eup %6997  ;;  %v5893_v30 = vsub.s32 5, %v8118_v35 }
 0xd08   :  { %v5788_v40 = vmul.f32 %v6998_v34, %v6310_v7 }
 0xd09   :  { %5800 = vadd.xlane.f32.xlu0 %v5789_v32 }
 0xd0b   :  { %v7000_v38 = vpop.eup %6999 }
 0xd0c   :  { %v7002_v36 = vpop.eup %7001  ;;  %v5790_v44 = vmul.f32 %v7000_v38, %v6310_v7 }
 0xd0d   :  { %5798 = vadd.xlane.f32.xlu0 %v5788_v40  ;;  %v5791_v9 = vmul.f32 %v7002_v36, %v6310_v7  ;;  %v5897_v40 = vsub.s32 6, %v8118_v35 }
 0xd0e   :  { %5802 = vadd.xlane.f32.xlu1 %v5790_v44 }
 0xd0f   :  { %v7004_v6 = vpop.eup %7003 }
 0xd10   :  { %v7006_v57 = vpop.eup %7005  ;;  %v5792_v27 = vmul.f32 %v7004_v6, %v6310_v7 }
 0xd11   :  { %5804 = vadd.xlane.f32.xlu0 %v5791_v9  ;;  %v5793_v13 = vmul.f32 %v7006_v57, %v6310_v7  ;;  %v5901_v9 = vsub.s32 7, %v8118_v35 }
 0xd12   :  { %5806 = vadd.xlane.f32.xlu1 %v5792_v27 }
 0xd15   :  { %5808 = vadd.xlane.f32.xlu0 %v5793_v13 }
 0xd91   :  { %v5797_v52 = vpop.xlane.xlu1 %5796 }
 0xd92   :  { %v5795_v39 = vpop.xlane.xlu0 %5794  ;;  %v5827_v55 = vrot.slane %v5797_v52, %v8121_v18 }
 0xd93   :  { %v5823_v41 = vrot.slane %v5795_v39, %v8121_v18 }
 0xd95   :  { %v5853_v37 = vsel %vm5852_vm5, %v5827_v55, %v5823_v41 }
 0xd96   :  { %v5801_v10 = vpop.xlane.xlu0 %5800 }
 0xd97   :  { %v5835_v59 = vrot.slane %v5801_v10, %v8121_v18 }
 0xd9a   :  { %v5799_v50 = vpop.xlane.xlu0 %5798 }
 0xd9b   :  { %v5831_v15 = vrot.slane %v5799_v50, %v8121_v18  ;;  %v5803_v0 = vpop.xlane.xlu1 %5802 }
 0xd9c   :  { %v5839_v20 = vrot.slane %v5803_v0, %v8121_v18 }
 0xd9d   :  { %v5855_v43 = vsel %vm5854_vm6, %v5831_v15, %v5853_v37 }
 0xd9e   :  { %v5857_v12 = vsel %vm5856_vm7, %v5835_v59, %v5855_v43  ;;  %v5805_v3 = vpop.xlane.xlu0 %5804 }
 0xd9f   :  { %v5859_v56 = vsel %vm5858_vm8, %v5839_v20, %v5857_v12  ;;  %v5843_v45 = vrot.slane %v5805_v3, %v8121_v18  ;;  %v5807_v58 = vpop.xlane.xlu1 %5806 }
 0xda0   :  { %v5847_v61 = vrot.slane %v5807_v58, %v8121_v18 }
 0xda1   :  { %v5861_v4 = vsel %vm5860_vm9, %v5843_v45, %v5859_v56 }
 0xda2   :  { %v5809_v1 = vpop.xlane.xlu0 %5808  ;;  %v5863_v49 = vsel %vm5862_vm10, %v5847_v61, %v5861_v4 }
 0xda3   :  { %v5851_v14 = vrot.slane %v5809_v1, %v8121_v18 }
 0xda5   :  { %v5865_v47 = vsel %vm5864_vm11, %v5851_v14, %v5863_v49 }
 0xda6   :  { %v5867_v46 = vsel %vm207_vm2, %v5865_v47, -inf }
 0xda7   :  { %5868 = vmax.xlane.f32.xlu1 %v5867_v46 }
 0xe34   :  { %v5869_v62 = vpop.xlane.xlu1 %5868 }
 0xe35   :  { %v5874_v5 = vrot.slane %v5869_v62, %v5873_v25  ;;  %v5878_v7 = vrot.slane %v5869_v62, %v5877_v11  ;;  %v5882_v51 = vrot.slane %v5869_v62, %v5881_v24  ;;  %v5886_v31 = vrot.slane %v5869_v62, %v5885_v26 }
 0xe36   :  { %v5890_v32 = vrot.slane %v5869_v62, %v5889_v33  ;;  %v5894_v36 = vrot.slane %v5869_v62, %v5893_v30  ;;  %v5898_v57 = vrot.slane %v5869_v62, %v5897_v40 }
 0xe37   :  { %v5911_v28 = vsub.f32 %v5795_v39, %v5874_v5  ;;  %v5912_v54 = vsub.f32 %v5797_v52, %v5878_v7  ;;  %v5913_v16 = vsub.f32 %v5799_v50, %v5882_v51  ;;  %v5914_v34 = vsub.f32 %v5801_v10, %v5886_v31 }
 0xe38   :  { %v5915_v44 = vsub.f32 %v5803_v0, %v5890_v32  ;;  %v5916_v27 = vsub.f32 %v5805_v3, %v5894_v36  ;;  %v5902_v39 = vrot.slane %v5869_v62, %v5901_v9  ;;  %v5917_v52 = vsub.f32 %v5807_v58, %v5898_v57 }
 0xe39   :  { %v5919_v21 = vmul.f32 1.442695, %v5911_v28  ;;  %v5921_v22 = vmul.f32 1.442695, %v5912_v54  ;;  %v5923_v38 = vmul.f32 1.442695, %v5913_v16 }
 0xe3a   :  { %v5925_v6 = vmul.f32 1.442695, %v5914_v34  ;;  %v5927_v13 = vmul.f32 1.442695, %v5915_v44  ;;  %v5929_v10 = vmul.f32 1.442695, %v5916_v27  ;;  %v5918_v41 = vsub.f32 %v5809_v1, %v5902_v39 }
 0xe3b   :  { %7007 = vpow2.f32 %v5919_v21  ;;  %v5931_v50 = vmul.f32 1.442695, %v5917_v52 }
 0xe3c   :  { %7009 = vpow2.f32 %v5921_v22  ;;  %v5933_v0 = vmul.f32 1.442695, %v5918_v41 }
 0xe3d   :  { %7011 = vpow2.f32 %v5923_v38 }
 0xe3e   :  { %7013 = vpow2.f32 %v5925_v6 }
 0xe3f   :  { %7015 = vpow2.f32 %v5927_v13 }
 0xe40   :  { %7017 = vpow2.f32 %v5929_v10 }
 0xe41   :  { %7019 = vpow2.f32 %v5931_v50 }
 0xe42   :  { %7021 = vpow2.f32 %v5933_v0 }
 0xe45   :  { %v7008_v23 = vpop.eup %7007 }
 0xe46   :  { %v7010_v53 = vpop.eup %7009  ;;  %5944 = vperm.xlu0 %6861, %v7008_v23  }
 0xe47   :  { %5947 = vperm.xlu1 %6862, %v7010_v53   ;;  %v7012_v55 = vpop.eup %7011 }
 0xe48   :  { %v7014_v15 = vpop.eup %7013 }
 0xe49   :  { %v7016_v37 = vpop.eup %7015 }
 0xe4a   :  { %v7018_v59 = vpop.eup %7017 }
 0xe4b   :  { %5950 = vperm.xlu1 %6862, %v7012_v55   ;;  %v7020_v43 = vpop.eup %7019 }
 0xe4c   :  { %v7022_v20 = vpop.eup %7021 }
 0xe4f   :  { %5953 = vperm.xlu1 %6862, %v7014_v15  }
 0xe53   :  { %5956 = vperm.xlu1 %6862, %v7016_v37  }
 0xe57   :  { %5959 = vperm.xlu1 %6862, %v7018_v59  }
 0xe5b   :  { %5962 = vperm.xlu1 %6862, %v7020_v43  }
 0xe5f   :  { %5965 = vperm.xlu1 %6862, %v7022_v20  }
 0xec5   :  { %v5945_v58 = vpop.permute.xlu0 %5944 }
 0xec6   :  { %v5948_v12 = vpop.permute.xlu1 %5947  ;;  %v5970_v1 = vrot.slane %v5945_v58, %v8121_v18 }
 0xec7   :  { %v5974_v4 = vrot.slane %v5948_v12, %v8121_v18 }
 0xec9   :  { %v5999_v8 = vsel %vm5852_vm5, %v5974_v4, %v5970_v1 }
 0xeca   :  { %v5951_v3 = vpop.permute.xlu1 %5950 }
 0xecb   :  { %v5978_v14 = vrot.slane %v5951_v3, %v8121_v18 }
 0xecd   :  { %v6000_v5 = vsel %vm5854_vm6, %v5978_v14, %v5999_v8 }
 0xece   :  { %v5954_v56 = vpop.permute.xlu1 %5953 }
 0xecf   :  { %v5982_v49 = vrot.slane %v5954_v56, %v8121_v18 }
 0xed1   :  { %v6001_v51 = vsel %vm5856_vm7, %v5982_v49, %v6000_v5 }
 0xed2   :  { %v5957_v45 = vpop.permute.xlu1 %5956 }
 0xed3   :  { %v5986_v47 = vrot.slane %v5957_v45, %v8121_v18 }
 0xed5   :  { %v6002_v28 = vsel %vm5858_vm8, %v5986_v47, %v6001_v51 }
 0xed6   :  { %v5960_v61 = vpop.permute.xlu1 %5959 }
 0xed7   :  { %v5990_v62 = vrot.slane %v5960_v61, %v8121_v18 }
 0xed9   :  { %v6003_v31 = vsel %vm5860_vm9, %v5990_v62, %v6002_v28 }
 0xeda   :  { %v5963_v46 = vpop.permute.xlu1 %5962 }
 0xedb   :  { %v5994_v7 = vrot.slane %v5963_v46, %v8121_v18 }
 0xedd   :  { %v6004_v21 = vsel %vm5862_vm10, %v5994_v7, %v6003_v31 }
 0xede   :  { %v5966_v54 = vpop.permute.xlu1 %5965 }
 0xedf   :  { %v5998_v16 = vrot.slane %v5966_v54, %v8121_v18 }
 0xee1   :  { %v6005_v22 = vsel %vm5864_vm11, %v5998_v16, %v6004_v21 }
 0xee2   :  { %v6007_v32 = vsel %vm207_vm2, %v6005_v22, 0.0 }
 0xee3   :  { %6008 = vadd.xlane.f32.xlu1 %v6007_v32 }
 0xf70   :  { %v6009_v34 = vpop.xlane.xlu1 %6008 }
 0xf71   :  { %7023 = vrcp.f32 %v6009_v34 }
 0xf7b   :  { %v7024_v38 = vpop.eup %7023 }
 0xf7c   :  { %v6015_v36 = vrot.slane %v7024_v38, %v5873_v25  ;;  %v6019_v6 = vrot.slane %v7024_v38, %v5877_v11  ;;  %v6023_v18 = vrot.slane %v7024_v38, %v5881_v24  ;;  %v6027_v13 = vrot.slane %v7024_v38, %v5885_v26 }
 0xf7d   :  { %v6031_v52 = vrot.slane %v7024_v38, %v5889_v33  ;;  %v6035_v11 = vrot.slane %v7024_v38, %v5893_v30  ;;  %v6039_v24 = vrot.slane %v7024_v38, %v5897_v40  ;;  %v6043_v26 = vrot.slane %v7024_v38, %v5901_v9 }
 0xf7e   :  { %v6052_v44 = vmul.f32 %v7008_v23, %v6015_v36  ;;  %v6053_v57 = vmul.f32 %v7010_v53, %v6019_v6  ;;  %v6054_v27 = vmul.f32 %v7012_v55, %v6023_v18  ;;  %v6055_v39 = vmul.f32 %v7014_v15, %v6027_v13 }
 0xf7f   :  { %v6056_v25 = vmul.f32 %v7016_v37, %v6031_v52  ;;  %v6057_v23 = vmul.f32 %v7018_v59, %v6035_v11  ;;  %v6058_v53 = vmul.f32 %v7020_v43, %v6039_v24  ;;  %v6059_v10 = vmul.f32 %v7022_v20, %v6043_v26 }
 0xf80   :  { %6062 = vperm.xlu0 %6861, %v6052_v44  }
 0xf84   :  { %6067 = vperm.xlu0 %6861, %v6053_v57  }
 0xf88   :  { %6072 = vperm.xlu0 %6861, %v6054_v27  }
 0xf8c   :  { %6077 = vperm.xlu0 %6861, %v6055_v39  }
 0xf90   :  { %6082 = vperm.xlu0 %6861, %v6056_v25  }
 0xf94   :  { %6087 = vperm.xlu0 %6861, %v6057_v23  }
 0xf98   :  { %6092 = vperm.xlu0 %6861, %v6058_v53  }
 0xf9c   :  { %6097 = vperm.xlu0 %6861, %v6059_v10  }
 0xfff   :  { %v6063_v55 = vpop.permute.xlu0 %6062 }
0x1000   :  { %v6100_v30 = vmul.f32 %v6063_v55, %v8052_v29 }
0x1002   :  { %v6108_v35 = vsel %vm74_vm0, %v6100_v30, 0.0 }
0x1003   :  { %v6068_v33 = vpop.permute.xlu0 %6067  ;;  %v6109_v12 = vrot.slane %v6108_v35, 4 }
0x1004   :  { %v6101_v41 = vmul.f32 %v6068_v33, %v8066_v17 }
0x1005   :  { %v6110_v58 = vadd.f32 %v6109_v12, %v6108_v35 }
0x1006   :  { %v6115_v0 = vsel %vm74_vm0, %v6101_v41, 0.0 }
0x1007   :  { %v6073_v50 = vpop.permute.xlu0 %6072  ;;  %v6116_v59 = vrot.slane %v6115_v0, 4  ;;  %v6111_v8 = vrot.slane %v6110_v58, 2 }
0x1008   :  { %v6102_v15 = vmul.f32 %v6073_v50, %v8063_v48 }
0x1009   :  { %v6117_v56 = vadd.f32 %v6116_v59, %v6115_v0  ;;  %v6112_v21 = vadd.f32 %v6111_v8, %v6110_v58 }
0x100a   :  { %v6122_v40 = vsel %vm74_vm0, %v6102_v15, 0.0 }
0x100b   :  { %v6078_v37 = vpop.permute.xlu0 %6077  ;;  %v6123_v43 = vrot.slane %v6122_v40, 4 }
0x100c   :  { %v6103_v9 = vmul.f32 %v6078_v37, %v8082_v2  ;;  %v6118_v2 = vrot.slane %v6117_v56, 2 }
0x100d   :  { %v6124_v48 = vadd.f32 %v6123_v43, %v6122_v40 }
0x100e   :  { %v6129_v20 = vsel %vm74_vm0, %v6103_v9, 0.0  ;;  %v6119_v28 = vadd.f32 %v6118_v2, %v6117_v56 }
0x100f   :  { %v6130_v17 = vrot.slane %v6129_v20, 4  ;;  %v6083_v3 = vpop.permute.xlu0 %6082  ;;  %v6125_v47 = vrot.slane %v6124_v48, 2 }
0x1010   :  { %v6104_v29 = vmul.f32 %v6083_v3, %v8079_v19  ;;  %v6120_v44 = vrot.slane %v6119_v28, 1 }
0x1011   :  { %v6131_v61 = vadd.f32 %v6130_v17, %v6129_v20  ;;  %v6126_v31 = vadd.f32 %v6125_v47, %v6124_v48 }
0x1012   :  { %v6136_v45 = vsel %vm74_vm0, %v6104_v29, 0.0  ;;  %v6121_v11 = vadd.f32 %v6120_v44, %v6119_v28 }
0x1013   :  { %v6137_v4 = vrot.slane %v6136_v45, 4  ;;  %v6088_v1 = vpop.permute.xlu0 %6087  ;;  %v6132_v62 = vrot.slane %v6131_v61, 2  ;;  %v6127_v18 = vrot.slane %v6126_v31, 1 }
0x1014   :  { %v6105_v14 = vmul.f32 %v6088_v1, %v8098_v63 }
0x1015   :  { %v6138_v49 = vadd.f32 %v6137_v4, %v6136_v45  ;;  %v6133_v22 = vadd.f32 %v6132_v62, %v6131_v61  ;;  %v6128_v26 = vadd.f32 %v6127_v18, %v6126_v31 }
0x1016   :  { %v6143_v46 = vsel %vm74_vm0, %v6105_v14, 0.0 }
0x1017   :  { %v6144_v5 = vrot.slane %v6143_v46, 4  ;;  %v6093_v7 = vpop.permute.xlu0 %6092  ;;  %v6139_v19 = vrot.slane %v6138_v49, 2  ;;  %v6134_v13 = vrot.slane %v6133_v22, 1 }
0x1018   :  { %v6106_v51 = vmul.f32 %v6093_v7, %v8095_v60  ;;  %v6113_v60 = vrot.slane %v6112_v21, 1 }
0x1019   :  { %v6145_v54 = vadd.f32 %v6144_v5, %v6143_v46  ;;  %v6140_v38 = vadd.f32 %v6139_v19, %v6138_v49  ;;  %v6135_v55 = vadd.f32 %v6134_v13, %v6133_v22 }
0x101a   :  { %v6150_v16 = vsel %vm74_vm0, %v6106_v51, 0.0  ;;  %v6114_v10 = vadd.f32 %v6113_v60, %v6112_v21 }
0x101b   :  { %v6146_v63 = vrot.slane %v6145_v54, 2  ;;  %v6151_v32 = vrot.slane %v6150_v16, 4  ;;  %v6098_v34 = vpop.permute.xlu0 %6097  ;;  %v6141_v25 = vrot.slane %v6140_v38, 1 }
0x101c   :  { %v6107_v36 = vmul.f32 %v6098_v34, %v8108_v42  ;;  %v6172_v50 = vsel %vm5852_vm5, %v6121_v11, %v6114_v10 }
0x101d   :  { %v6147_v6 = vadd.f32 %v6146_v63, %v6145_v54  ;;  %v6152_v57 = vadd.f32 %v6151_v32, %v6150_v16  ;;  %v6142_v41 = vadd.f32 %v6141_v25, %v6140_v38  ;;  %v6173_v0 = vsel %vm5854_vm6, %v6128_v26, %v6172_v50 }
0x101e   :  { %v6157_v27 = vsel %vm74_vm0, %v6107_v36, 0.0  ;;  %v6174_v37 = vsel %vm5856_vm7, %v6135_v55, %v6173_v0 }
0x101f   :  { %v6153_v39 = vrot.slane %v6152_v57, 2  ;;  %v6158_v52 = vrot.slane %v6157_v27, 4  ;;  %v6148_v23 = vrot.slane %v6147_v6, 1  ;;  %v6175_v9 = vsel %vm5858_vm8, %v6142_v41, %v6174_v37 }
0x1021   :  { %v6154_v24 = vadd.f32 %v6153_v39, %v6152_v57  ;;  %v6159_v53 = vadd.f32 %v6158_v52, %v6157_v27  ;;  %v6149_v30 = vadd.f32 %v6148_v23, %v6147_v6 }
0x1023   :  { %v6155_v33 = vrot.slane %v6154_v24, 1  ;;  %v6160_v42 = vrot.slane %v6159_v53, 2  ;;  %v6176_v43 = vsel %vm5860_vm9, %v6149_v30, %v6175_v9 }
0x1025   :  { %v6161_v15 = vadd.f32 %v6160_v42, %v6159_v53  ;;  %v6156_v40 = vadd.f32 %v6155_v33, %v6154_v24 }
0x1027   :  { %v6162_v35 = vrot.slane %v6161_v15, 1  ;;  %v6177_v20 = vsel %vm5862_vm10, %v6156_v40, %v6176_v43 }
0x1029   :  { %v6163_v59 = vadd.f32 %v6162_v35, %v6161_v15 }
0x102b   :  { %v6178_v12 = vsel %vm5864_vm11, %v6163_v59, %v6177_v20 }
0x102c   :  { %6180 = vst.msk [vmem:[#allocation8] sm:$0xff] %vm74_vm0, %v6178_v12 }
0x102d   :  { %7102 = shalt.err (!%p7099_p0)
}
0x102e   :  { %s7103_s23 = scalar_lea.hbm %s8236_s5, 128 }
0x102f   :  { %p7104_p1 = scmp.ne.s32.totalorder %s8236_s5, %s7103_s23  ;;  %p7107_p2 = scmp.lt.u32.totalorder %s7103_s23, %s8236_s5 }
0x1031   :  { %p7109_p3 = pnand %p7107_p2, %p7104_p1 }
0x1033   :  { %7112 = shalt.err (!%p7109_p3)
}
0x1034   :  { %6190 = dma.vmem_to_hbm [thread:$0]  %s6188_s4, 128, %s8236_s5, [#allocation4]  }
0x1035   :  { %7117 = dma.done.wait [#allocation4], 128  }
0x1036   :  { %7118 = vsyncadd [#allocation4], 4294967168 }
0x1037   :  { %6194 = vsyncpa [#allocation3], 1 }
0x1038   :  { %6195 = vsyncpa [#allocation6], 1 }
0x1039   :  { %6196 = vsyncpa [#allocation4], 1 }

</bundles_post_ra>
